<compile_context>
chip_gen: v7x
topology: tpu7x:2x2x1
jax: 0.10.0
libtpu: 0.0.40
codegen_flags: <defaults>
</compile_context>

<pallas_src>
import functools

import jax
import jax.numpy as jnp
from jax import lax
from jax.experimental import pallas as pl
from jax.experimental.pallas import tpu as pltpu
import numpy as np


def rcnn_kernel(x2d_ref,                          # (T*B, E)  time-major flattened input
                wih_f_ref, whh_f_ref, b_f_ref,    # (E,4C), (C,4C), (1,4C)  forward dir
                wih_b_ref, whh_b_ref, b_b_ref,    # (E,4C), (C,4C), (1,4C)  backward dir
                whf_ref, whb_ref, wx_ref,         # (C,H), (C,H), (E,H)  feature weight slices
                bfeat_ref,                        # (1, H)
                wout_ref, bout_ref,               # (H, L), (1, L)
                out_ref,                          # (B, L)
                *, T, B):
    TB, E = x2d_ref.shape
    C = whh_f_ref.shape[0]
    H = whf_ref.shape[1]

    x2d = x2d_ref[...]

    # ---- input projections for ALL timesteps, both directions (off the serial path) ----
    # (T*B, E) @ (E, 4C) + bias, done once per direction; gate order along lanes: i|f|g|o.
    xproj_f = jnp.dot(x2d, wih_f_ref[...], preferred_element_type=jnp.float32) + b_f_ref[...]
    xproj_b = jnp.dot(x2d, wih_b_ref[...], preferred_element_type=jnp.float32) + b_b_ref[...]

    # Hoist recurrent weights once.
    whh_f = whh_f_ref[...]
    whh_b = whh_b_ref[...]

    def cell(gates, c):
        # PyTorch gate order i, f, g, o at static lane offsets 0, C, 2C, 3C.
        i = jax.nn.sigmoid(gates[:, 0:C])
        f = jax.nn.sigmoid(gates[:, C:2 * C])
        g = jnp.tanh(gates[:, 2 * C:3 * C])
        o = jax.nn.sigmoid(gates[:, 3 * C:4 * C])
        c_new = f * c + i * g
        h_new = o * jnp.tanh(c_new)
        return h_new, c_new

    hf = jnp.zeros((B, C), jnp.float32)
    cf = jnp.zeros((B, C), jnp.float32)
    hb = jnp.zeros((B, C), jnp.float32)
    cb = jnp.zeros((B, C), jnp.float32)

    hf_t = [None] * T
    hb_t = [None] * T

    # ---- interleaved forward / backward recurrence, fully unrolled (T is small/static).
    # Only ONE recurrent matmul per direction per step remains on the critical path.
    for t in range(T):
        s = T - 1 - t
        gf = xproj_f[t * B:(t + 1) * B, :] + jnp.dot(
            hf, whh_f, preferred_element_type=jnp.float32)
        gb = xproj_b[s * B:(s + 1) * B, :] + jnp.dot(
            hb, whh_b, preferred_element_type=jnp.float32)
        hf, cf = cell(gf, cf)
        hb, cb = cell(gb, cb)
        hf_t[t] = hf
        hb_t[s] = hb

    # ---- batched feature linear + ReLU + temporal max-pool (all off the serial path) ----
    hf_all = jnp.concatenate(hf_t, axis=0)          # (T*B, C), time-major rows
    hb_all = jnp.concatenate(hb_t, axis=0)          # (T*B, C)

    hid = (jnp.dot(hf_all, whf_ref[...], preferred_element_type=jnp.float32)
           + jnp.dot(hb_all, whb_ref[...], preferred_element_type=jnp.float32)
           + jnp.dot(x2d, wx_ref[...], preferred_element_type=jnp.float32)
           + bfeat_ref[...])
    hid = jnp.maximum(hid, 0.0)                     # ReLU

    # max-pool over time: short static chain of elementwise maxes over (B, H) slices.
    pooled = hid[0:B, :]
    for t in range(1, T):
        pooled = jnp.maximum(pooled, hid[t * B:(t + 1) * B, :])

    # ---- output linear + log_softmax ----------------------------------------------------
    logits = (jnp.dot(pooled, wout_ref[...], preferred_element_type=jnp.float32)
              + bout_ref[...])
    m = jnp.max(logits, axis=1, keepdims=True)
    z = logits - m
    lse = jnp.log(jnp.sum(jnp.exp(z), axis=1, keepdims=True))
    out_ref[...] = z - lse


def rcnn_forward(x, p):
    """x: (B, T, E) float32. Returns (B, label_dim) log-probabilities."""
    B, T, E = x.shape
    C = p["whh_f"].shape[1]
    H = p["wfeat"].shape[1]
    L = p["wout"].shape[1]

    # time-major, flattened: row index = t*B + b
    x2d = jnp.transpose(x, (1, 0, 2)).reshape(T * B, E).astype(jnp.float32)

    def fuse_w(w):   # (4, rows, C) -> (rows, 4C), gate blocks [i|f|g|o] along lanes
        return jnp.concatenate([w[0], w[1], w[2], w[3]], axis=1)

    def fuse_b(b):   # (4, 1, C) -> (1, 4C)
        return b.reshape(1, -1)

    wfeat = p["wfeat"]
    args = (x2d,
            fuse_w(p["wih_f"]), fuse_w(p["whh_f"]), fuse_b(p["b_f"]),
            fuse_w(p["wih_b"]), fuse_w(p["whh_b"]), fuse_b(p["b_b"]),
            wfeat[0:C, :], wfeat[C:2 * C, :], wfeat[2 * C:, :], p["bfeat"],
            p["wout"], p["bout"])

    in_specs = [pl.BlockSpec(a.shape, lambda i, nd=a.ndim: (0,) * nd) for a in args]

    kernel = functools.partial(rcnn_kernel, T=T, B=B)

    return pl.pallas_call(
        kernel,
        out_shape=jax.ShapeDtypeStruct((B, L), jnp.float32),
        grid_spec=pltpu.PrefetchScalarGridSpec(
            num_scalar_prefetch=0,
            grid=(1,),
            in_specs=in_specs,
            out_specs=pl.BlockSpec((B, L), lambda i: (0, 0)),
        ),
        compiler_params=pltpu.CompilerParams(dimension_semantics=("arbitrary",)),
    )(*args)


# ---------------------------- pure-JAX reference ------------------------------
def rcnn_reference(x, p):
    B, T, E = x.shape
    C = p["whh_f"].shape[1]

    def step(carry, x_t, wih, whh, b):
        h, c = carry
        i = jax.nn.sigmoid(x_t @ wih[0] + h @ whh[0] + b[0])
        f = jax.nn.sigmoid(x_t @ wih[1] + h @ whh[1] + b[1])
        g = jnp.tanh(x_t @ wih[2] + h @ whh[2] + b[2])
        o = jax.nn.sigmoid(x_t @ wih[3] + h @ whh[3] + b[3])
        c = f * c + i * g
        h = o * jnp.tanh(c)
        return (h, c), h

    h0 = jnp.zeros((B, C), jnp.float32)
    c0 = jnp.zeros((B, C), jnp.float32)
    x_tbe = jnp.transpose(x, (1, 0, 2))

    _, h_f = lax.scan(lambda cr, xt: step(cr, xt, p["wih_f"], p["whh_f"], p["b_f"]),
                      (h0, c0), x_tbe)
    _, h_b = lax.scan(lambda cr, xt: step(cr, xt, p["wih_b"], p["whh_b"], p["b_b"]),
                      (h0, c0), x_tbe[::-1])
    h_b = h_b[::-1]

    feats = jnp.concatenate([h_f, h_b, x_tbe], axis=-1)          # (T, B, 2C+E)
    hid = jax.nn.relu(feats @ p["wfeat"] + p["bfeat"])           # (T, B, H)
    pooled = jnp.max(hid, axis=0)                                # (B, H)
    logits = pooled @ p["wout"] + p["bout"]
    return jax.nn.log_softmax(logits, axis=1)


def make_params(key, E, C, H, L):
    ks = jax.random.split(key, 11)
    s = 0.1

    def gate_w(k, rows):
        # PyTorch stores (4C, rows); we keep (4, rows, C) so each gate matmul is x @ W.
        w = s * jax.random.normal(k, (4, C, rows), jnp.float32)
        return jnp.transpose(w, (0, 2, 1))

    return dict(
        wih_f=gate_w(ks[0], E), whh_f=gate_w(ks[1], C),
        b_f=s * jax.random.normal(ks[2], (4, 1, C), jnp.float32),    # b_ih + b_hh combined
        wih_b=gate_w(ks[3], E), whh_b=gate_w(ks[4], C),
        b_b=s * jax.random.normal(ks[5], (4, 1, C), jnp.float32),
        wfeat=s * jax.random.normal(ks[6], (2 * C + E, H), jnp.float32),
        bfeat=s * jax.random.normal(ks[7], (1, H), jnp.float32),
        wout=s * jax.random.normal(ks[8], (H, L), jnp.float32),
        bout=s * jax.random.normal(ks[9], (1, L), jnp.float32),
    )


if __name__ == "__main__":
    # config: embedding_dim=16, hidden_dim=32, context_dim=16, lstm_layers=1, label_dim=4
    B, T, E, C, H, L = 2, 8, 16, 16, 32, 4

    key = jax.random.PRNGKey(0)
    kx, kp = jax.random.split(key)
    x = jax.random.normal(kx, (B, T, E), jnp.float32)
    params = make_params(kp, E, C, H, L)

    out = jax.block_until_ready(rcnn_forward(x, params))
    ref = jax.block_until_ready(rcnn_reference(x, params))

    np.testing.assert_allclose(np.asarray(out), np.asarray(ref), rtol=1e-5, atol=1e-5)
    assert out.shape == (B, L)
    print("KERNEL_OK")
</pallas_src>

<mosaic_0001>
module attributes {stable_mosaic.version = 11 : i64} {
  func.func @rcnn_kernel(%arg0: i32, %arg1: memref<16x16xf32, #tpu.memory_space<vmem>>, %arg2: memref<16x64xf32, #tpu.memory_space<vmem>>, %arg3: memref<16x64xf32, #tpu.memory_space<vmem>>, %arg4: memref<1x64xf32, #tpu.memory_space<vmem>>, %arg5: memref<16x64xf32, #tpu.memory_space<vmem>>, %arg6: memref<16x64xf32, #tpu.memory_space<vmem>>, %arg7: memref<1x64xf32, #tpu.memory_space<vmem>>, %arg8: memref<16x32xf32, #tpu.memory_space<vmem>>, %arg9: memref<16x32xf32, #tpu.memory_space<vmem>>, %arg10: memref<16x32xf32, #tpu.memory_space<vmem>>, %arg11: memref<1x32xf32, #tpu.memory_space<vmem>>, %arg12: memref<32x4xf32, #tpu.memory_space<vmem>>, %arg13: memref<1x4xf32, #tpu.memory_space<vmem>>, %arg14: memref<2x4xf32, #tpu.memory_space<vmem>>) attributes {dimension_semantics = [#tpu.dimension_semantics<arbitrary>], iteration_bounds = array<i64: 1>, scalar_prefetch = 0 : i64, scratch_operands = 0 : i64, tpu.core_type = #tpu.core_type<tc>, window_params = [{pipeline_mode = #tpu.pipeline_mode<synchronous>, transform_indices = @transform_0, window_bounds = array<i64: 16, 16>}, {pipeline_mode = #tpu.pipeline_mode<synchronous>, transform_indices = @transform_1, window_bounds = array<i64: 16, 64>}, {pipeline_mode = #tpu.pipeline_mode<synchronous>, transform_indices = @transform_2, window_bounds = array<i64: 16, 64>}, {pipeline_mode = #tpu.pipeline_mode<synchronous>, transform_indices = @transform_3, window_bounds = array<i64: 1, 64>}, {pipeline_mode = #tpu.pipeline_mode<synchronous>, transform_indices = @transform_4, window_bounds = array<i64: 16, 64>}, {pipeline_mode = #tpu.pipeline_mode<synchronous>, transform_indices = @transform_5, window_bounds = array<i64: 16, 64>}, {pipeline_mode = #tpu.pipeline_mode<synchronous>, transform_indices = @transform_6, window_bounds = array<i64: 1, 64>}, {pipeline_mode = #tpu.pipeline_mode<synchronous>, transform_indices = @transform_7, window_bounds = array<i64: 16, 32>}, {pipeline_mode = #tpu.pipeline_mode<synchronous>, transform_indices = @transform_8, window_bounds = array<i64: 16, 32>}, {pipeline_mode = #tpu.pipeline_mode<synchronous>, transform_indices = @transform_9, window_bounds = array<i64: 16, 32>}, {pipeline_mode = #tpu.pipeline_mode<synchronous>, transform_indices = @transform_10, window_bounds = array<i64: 1, 32>}, {pipeline_mode = #tpu.pipeline_mode<synchronous>, transform_indices = @transform_11, window_bounds = array<i64: 32, 4>}, {pipeline_mode = #tpu.pipeline_mode<synchronous>, transform_indices = @transform_12, window_bounds = array<i64: 1, 4>}, {pipeline_mode = #tpu.pipeline_mode<synchronous>, transform_indices = @transform_13, window_bounds = array<i64: 2, 4>}]} {
    %c0 = arith.constant 0 : index
    %c0_0 = arith.constant 0 : index
    %0 = vector.load %arg1[%c0, %c0_0] : memref<16x16xf32, #tpu.memory_space<vmem>>, vector<16x16xf32>
    %c0_1 = arith.constant 0 : index
    %c0_2 = arith.constant 0 : index
    %1 = vector.load %arg2[%c0_1, %c0_2] : memref<16x64xf32, #tpu.memory_space<vmem>>, vector<16x64xf32>
    %cst = arith.constant dense<0.000000e+00> : vector<16x64xf32>
    %2 = tpu.matmul %0, %1, %cst {dimension_numbers = #tpu.dot_dimension_numbers<[1], [0], [0], [1], [0, 0, 1, 1], [], []>} : vector<16x16xf32>, vector<16x64xf32>, vector<16x64xf32> -> vector<16x64xf32>
    %c0_3 = arith.constant 0 : index
    %c0_4 = arith.constant 0 : index
    %3 = vector.load %arg4[%c0_3, %c0_4] : memref<1x64xf32, #tpu.memory_space<vmem>>, vector<1x64xf32>
    %4 = vector.broadcast %3 : vector<1x64xf32> to vector<16x64xf32>
    %5 = arith.addf %2, %4 : vector<16x64xf32>
    %c0_5 = arith.constant 0 : index
    %c0_6 = arith.constant 0 : index
    %6 = vector.load %arg5[%c0_5, %c0_6] : memref<16x64xf32, #tpu.memory_space<vmem>>, vector<16x64xf32>
    %cst_7 = arith.constant dense<0.000000e+00> : vector<16x64xf32>
    %7 = tpu.matmul %0, %6, %cst_7 {dimension_numbers = #tpu.dot_dimension_numbers<[1], [0], [0], [1], [0, 0, 1, 1], [], []>} : vector<16x16xf32>, vector<16x64xf32>, vector<16x64xf32> -> vector<16x64xf32>
    %c0_8 = arith.constant 0 : index
    %c0_9 = arith.constant 0 : index
    %8 = vector.load %arg7[%c0_8, %c0_9] : memref<1x64xf32, #tpu.memory_space<vmem>>, vector<1x64xf32>
    %9 = vector.broadcast %8 : vector<1x64xf32> to vector<16x64xf32>
    %10 = arith.addf %7, %9 : vector<16x64xf32>
    %c0_10 = arith.constant 0 : index
    %c0_11 = arith.constant 0 : index
    %11 = vector.load %arg3[%c0_10, %c0_11] : memref<16x64xf32, #tpu.memory_space<vmem>>, vector<16x64xf32>
    %c0_12 = arith.constant 0 : index
    %c0_13 = arith.constant 0 : index
    %12 = vector.load %arg6[%c0_12, %c0_13] : memref<16x64xf32, #tpu.memory_space<vmem>>, vector<16x64xf32>
    %cst_14 = arith.constant 0.000000e+00 : f32
    %13 = vector.broadcast %cst_14 : f32 to vector<2x16xf32>
    %cst_15 = arith.constant 0.000000e+00 : f32
    %14 = vector.broadcast %cst_15 : f32 to vector<2x16xf32>
    %cst_16 = arith.constant 0.000000e+00 : f32
    %15 = vector.broadcast %cst_16 : f32 to vector<2x16xf32>
    %cst_17 = arith.constant 0.000000e+00 : f32
    %16 = vector.broadcast %cst_17 : f32 to vector<2x16xf32>
    %17 = vector.extract_strided_slice %5 {offsets = [0, 0], sizes = [2, 64], strides = [1, 1]} : vector<16x64xf32> to vector<2x64xf32>
    %cst_18 = arith.constant dense<0.000000e+00> : vector<2x64xf32>
    %18 = tpu.matmul %13, %11, %cst_18 {dimension_numbers = #tpu.dot_dimension_numbers<[1], [0], [0], [1], [0, 0, 1, 1], [], []>} : vector<2x16xf32>, vector<16x64xf32>, vector<2x64xf32> -> vector<2x64xf32>
    %19 = arith.addf %17, %18 : vector<2x64xf32>
    %20 = vector.extract_strided_slice %10 {offsets = [14, 0], sizes = [2, 64], strides = [1, 1]} : vector<16x64xf32> to vector<2x64xf32>
    %cst_19 = arith.constant dense<0.000000e+00> : vector<2x64xf32>
    %21 = tpu.matmul %15, %12, %cst_19 {dimension_numbers = #tpu.dot_dimension_numbers<[1], [0], [0], [1], [0, 0, 1, 1], [], []>} : vector<2x16xf32>, vector<16x64xf32>, vector<2x64xf32> -> vector<2x64xf32>
    %22 = arith.addf %20, %21 : vector<2x64xf32>
    %23 = vector.extract_strided_slice %19 {offsets = [0, 0], sizes = [2, 16], strides = [1, 1]} : vector<2x64xf32> to vector<2x16xf32>
    %24 = arith.negf %23 : vector<2x16xf32>
    %25 = math.exp %24 : vector<2x16xf32>
    %cst_20 = arith.constant 1.000000e+00 : f32
    %26 = vector.broadcast %cst_20 : f32 to vector<2x16xf32>
    %27 = arith.addf %26, %25 : vector<2x16xf32>
    %28 = arith.divf %26, %27 : vector<2x16xf32>
    %29 = vector.extract_strided_slice %19 {offsets = [0, 16], sizes = [2, 16], strides = [1, 1]} : vector<2x64xf32> to vector<2x16xf32>
    %30 = arith.negf %29 : vector<2x16xf32>
    %31 = math.exp %30 : vector<2x16xf32>
    %cst_21 = arith.constant 1.000000e+00 : f32
    %32 = vector.broadcast %cst_21 : f32 to vector<2x16xf32>
    %33 = arith.addf %32, %31 : vector<2x16xf32>
    %34 = arith.divf %32, %33 : vector<2x16xf32>
    %35 = vector.extract_strided_slice %19 {offsets = [0, 32], sizes = [2, 16], strides = [1, 1]} : vector<2x64xf32> to vector<2x16xf32>
    %36 = math.tanh %35 : vector<2x16xf32>
    %37 = vector.extract_strided_slice %19 {offsets = [0, 48], sizes = [2, 16], strides = [1, 1]} : vector<2x64xf32> to vector<2x16xf32>
    %38 = arith.negf %37 : vector<2x16xf32>
    %39 = math.exp %38 : vector<2x16xf32>
    %cst_22 = arith.constant 1.000000e+00 : f32
    %40 = vector.broadcast %cst_22 : f32 to vector<2x16xf32>
    %41 = arith.addf %40, %39 : vector<2x16xf32>
    %42 = arith.divf %40, %41 : vector<2x16xf32>
    %43 = arith.mulf %34, %14 : vector<2x16xf32>
    %44 = arith.mulf %28, %36 : vector<2x16xf32>
    %45 = arith.addf %43, %44 : vector<2x16xf32>
    %46 = math.tanh %45 : vector<2x16xf32>
    %47 = arith.mulf %42, %46 : vector<2x16xf32>
    %48 = vector.extract_strided_slice %22 {offsets = [0, 0], sizes = [2, 16], strides = [1, 1]} : vector<2x64xf32> to vector<2x16xf32>
    %49 = arith.negf %48 : vector<2x16xf32>
    %50 = math.exp %49 : vector<2x16xf32>
    %cst_23 = arith.constant 1.000000e+00 : f32
    %51 = vector.broadcast %cst_23 : f32 to vector<2x16xf32>
    %52 = arith.addf %51, %50 : vector<2x16xf32>
    %53 = arith.divf %51, %52 : vector<2x16xf32>
    %54 = vector.extract_strided_slice %22 {offsets = [0, 16], sizes = [2, 16], strides = [1, 1]} : vector<2x64xf32> to vector<2x16xf32>
    %55 = arith.negf %54 : vector<2x16xf32>
    %56 = math.exp %55 : vector<2x16xf32>
    %cst_24 = arith.constant 1.000000e+00 : f32
    %57 = vector.broadcast %cst_24 : f32 to vector<2x16xf32>
    %58 = arith.addf %57, %56 : vector<2x16xf32>
    %59 = arith.divf %57, %58 : vector<2x16xf32>
    %60 = vector.extract_strided_slice %22 {offsets = [0, 32], sizes = [2, 16], strides = [1, 1]} : vector<2x64xf32> to vector<2x16xf32>
    %61 = math.tanh %60 : vector<2x16xf32>
    %62 = vector.extract_strided_slice %22 {offsets = [0, 48], sizes = [2, 16], strides = [1, 1]} : vector<2x64xf32> to vector<2x16xf32>
    %63 = arith.negf %62 : vector<2x16xf32>
    %64 = math.exp %63 : vector<2x16xf32>
    %cst_25 = arith.constant 1.000000e+00 : f32
    %65 = vector.broadcast %cst_25 : f32 to vector<2x16xf32>
    %66 = arith.addf %65, %64 : vector<2x16xf32>
    %67 = arith.divf %65, %66 : vector<2x16xf32>
    %68 = arith.mulf %59, %16 : vector<2x16xf32>
    %69 = arith.mulf %53, %61 : vector<2x16xf32>
    %70 = arith.addf %68, %69 : vector<2x16xf32>
    %71 = math.tanh %70 : vector<2x16xf32>
    %72 = arith.mulf %67, %71 : vector<2x16xf32>
    %73 = vector.extract_strided_slice %5 {offsets = [2, 0], sizes = [2, 64], strides = [1, 1]} : vector<16x64xf32> to vector<2x64xf32>
    %cst_26 = arith.constant dense<0.000000e+00> : vector<2x64xf32>
    %74 = tpu.matmul %47, %11, %cst_26 {dimension_numbers = #tpu.dot_dimension_numbers<[1], [0], [0], [1], [0, 0, 1, 1], [], []>} : vector<2x16xf32>, vector<16x64xf32>, vector<2x64xf32> -> vector<2x64xf32>
    %75 = arith.addf %73, %74 : vector<2x64xf32>
    %76 = vector.extract_strided_slice %10 {offsets = [12, 0], sizes = [2, 64], strides = [1, 1]} : vector<16x64xf32> to vector<2x64xf32>
    %cst_27 = arith.constant dense<0.000000e+00> : vector<2x64xf32>
    %77 = tpu.matmul %72, %12, %cst_27 {dimension_numbers = #tpu.dot_dimension_numbers<[1], [0], [0], [1], [0, 0, 1, 1], [], []>} : vector<2x16xf32>, vector<16x64xf32>, vector<2x64xf32> -> vector<2x64xf32>
    %78 = arith.addf %76, %77 : vector<2x64xf32>
    %79 = vector.extract_strided_slice %75 {offsets = [0, 0], sizes = [2, 16], strides = [1, 1]} : vector<2x64xf32> to vector<2x16xf32>
    %80 = arith.negf %79 : vector<2x16xf32>
    %81 = math.exp %80 : vector<2x16xf32>
    %cst_28 = arith.constant 1.000000e+00 : f32
    %82 = vector.broadcast %cst_28 : f32 to vector<2x16xf32>
    %83 = arith.addf %82, %81 : vector<2x16xf32>
    %84 = arith.divf %82, %83 : vector<2x16xf32>
    %85 = vector.extract_strided_slice %75 {offsets = [0, 16], sizes = [2, 16], strides = [1, 1]} : vector<2x64xf32> to vector<2x16xf32>
    %86 = arith.negf %85 : vector<2x16xf32>
    %87 = math.exp %86 : vector<2x16xf32>
    %cst_29 = arith.constant 1.000000e+00 : f32
    %88 = vector.broadcast %cst_29 : f32 to vector<2x16xf32>
    %89 = arith.addf %88, %87 : vector<2x16xf32>
    %90 = arith.divf %88, %89 : vector<2x16xf32>
    %91 = vector.extract_strided_slice %75 {offsets = [0, 32], sizes = [2, 16], strides = [1, 1]} : vector<2x64xf32> to vector<2x16xf32>
    %92 = math.tanh %91 : vector<2x16xf32>
    %93 = vector.extract_strided_slice %75 {offsets = [0, 48], sizes = [2, 16], strides = [1, 1]} : vector<2x64xf32> to vector<2x16xf32>
    %94 = arith.negf %93 : vector<2x16xf32>
    %95 = math.exp %94 : vector<2x16xf32>
    %cst_30 = arith.constant 1.000000e+00 : f32
    %96 = vector.broadcast %cst_30 : f32 to vector<2x16xf32>
    %97 = arith.addf %96, %95 : vector<2x16xf32>
    %98 = arith.divf %96, %97 : vector<2x16xf32>
    %99 = arith.mulf %90, %45 : vector<2x16xf32>
    %100 = arith.mulf %84, %92 : vector<2x16xf32>
    %101 = arith.addf %99, %100 : vector<2x16xf32>
    %102 = math.tanh %101 : vector<2x16xf32>
    %103 = arith.mulf %98, %102 : vector<2x16xf32>
    %104 = vector.extract_strided_slice %78 {offsets = [0, 0], sizes = [2, 16], strides = [1, 1]} : vector<2x64xf32> to vector<2x16xf32>
    %105 = arith.negf %104 : vector<2x16xf32>
    %106 = math.exp %105 : vector<2x16xf32>
    %cst_31 = arith.constant 1.000000e+00 : f32
    %107 = vector.broadcast %cst_31 : f32 to vector<2x16xf32>
    %108 = arith.addf %107, %106 : vector<2x16xf32>
    %109 = arith.divf %107, %108 : vector<2x16xf32>
    %110 = vector.extract_strided_slice %78 {offsets = [0, 16], sizes = [2, 16], strides = [1, 1]} : vector<2x64xf32> to vector<2x16xf32>
    %111 = arith.negf %110 : vector<2x16xf32>
    %112 = math.exp %111 : vector<2x16xf32>
    %cst_32 = arith.constant 1.000000e+00 : f32
    %113 = vector.broadcast %cst_32 : f32 to vector<2x16xf32>
    %114 = arith.addf %113, %112 : vector<2x16xf32>
    %115 = arith.divf %113, %114 : vector<2x16xf32>
    %116 = vector.extract_strided_slice %78 {offsets = [0, 32], sizes = [2, 16], strides = [1, 1]} : vector<2x64xf32> to vector<2x16xf32>
    %117 = math.tanh %116 : vector<2x16xf32>
    %118 = vector.extract_strided_slice %78 {offsets = [0, 48], sizes = [2, 16], strides = [1, 1]} : vector<2x64xf32> to vector<2x16xf32>
    %119 = arith.negf %118 : vector<2x16xf32>
    %120 = math.exp %119 : vector<2x16xf32>
    %cst_33 = arith.constant 1.000000e+00 : f32
    %121 = vector.broadcast %cst_33 : f32 to vector<2x16xf32>
    %122 = arith.addf %121, %120 : vector<2x16xf32>
    %123 = arith.divf %121, %122 : vector<2x16xf32>
    %124 = arith.mulf %115, %70 : vector<2x16xf32>
    %125 = arith.mulf %109, %117 : vector<2x16xf32>
    %126 = arith.addf %124, %125 : vector<2x16xf32>
    %127 = math.tanh %126 : vector<2x16xf32>
    %128 = arith.mulf %123, %127 : vector<2x16xf32>
    %129 = vector.extract_strided_slice %5 {offsets = [4, 0], sizes = [2, 64], strides = [1, 1]} : vector<16x64xf32> to vector<2x64xf32>
    %cst_34 = arith.constant dense<0.000000e+00> : vector<2x64xf32>
    %130 = tpu.matmul %103, %11, %cst_34 {dimension_numbers = #tpu.dot_dimension_numbers<[1], [0], [0], [1], [0, 0, 1, 1], [], []>} : vector<2x16xf32>, vector<16x64xf32>, vector<2x64xf32> -> vector<2x64xf32>
    %131 = arith.addf %129, %130 : vector<2x64xf32>
    %132 = vector.extract_strided_slice %10 {offsets = [10, 0], sizes = [2, 64], strides = [1, 1]} : vector<16x64xf32> to vector<2x64xf32>
    %cst_35 = arith.constant dense<0.000000e+00> : vector<2x64xf32>
    %133 = tpu.matmul %128, %12, %cst_35 {dimension_numbers = #tpu.dot_dimension_numbers<[1], [0], [0], [1], [0, 0, 1, 1], [], []>} : vector<2x16xf32>, vector<16x64xf32>, vector<2x64xf32> -> vector<2x64xf32>
    %134 = arith.addf %132, %133 : vector<2x64xf32>
    %135 = vector.extract_strided_slice %131 {offsets = [0, 0], sizes = [2, 16], strides = [1, 1]} : vector<2x64xf32> to vector<2x16xf32>
    %136 = arith.negf %135 : vector<2x16xf32>
    %137 = math.exp %136 : vector<2x16xf32>
    %cst_36 = arith.constant 1.000000e+00 : f32
    %138 = vector.broadcast %cst_36 : f32 to vector<2x16xf32>
    %139 = arith.addf %138, %137 : vector<2x16xf32>
    %140 = arith.divf %138, %139 : vector<2x16xf32>
    %141 = vector.extract_strided_slice %131 {offsets = [0, 16], sizes = [2, 16], strides = [1, 1]} : vector<2x64xf32> to vector<2x16xf32>
    %142 = arith.negf %141 : vector<2x16xf32>
    %143 = math.exp %142 : vector<2x16xf32>
    %cst_37 = arith.constant 1.000000e+00 : f32
    %144 = vector.broadcast %cst_37 : f32 to vector<2x16xf32>
    %145 = arith.addf %144, %143 : vector<2x16xf32>
    %146 = arith.divf %144, %145 : vector<2x16xf32>
    %147 = vector.extract_strided_slice %131 {offsets = [0, 32], sizes = [2, 16], strides = [1, 1]} : vector<2x64xf32> to vector<2x16xf32>
    %148 = math.tanh %147 : vector<2x16xf32>
    %149 = vector.extract_strided_slice %131 {offsets = [0, 48], sizes = [2, 16], strides = [1, 1]} : vector<2x64xf32> to vector<2x16xf32>
    %150 = arith.negf %149 : vector<2x16xf32>
    %151 = math.exp %150 : vector<2x16xf32>
    %cst_38 = arith.constant 1.000000e+00 : f32
    %152 = vector.broadcast %cst_38 : f32 to vector<2x16xf32>
    %153 = arith.addf %152, %151 : vector<2x16xf32>
    %154 = arith.divf %152, %153 : vector<2x16xf32>
    %155 = arith.mulf %146, %101 : vector<2x16xf32>
    %156 = arith.mulf %140, %148 : vector<2x16xf32>
    %157 = arith.addf %155, %156 : vector<2x16xf32>
    %158 = math.tanh %157 : vector<2x16xf32>
    %159 = arith.mulf %154, %158 : vector<2x16xf32>
    %160 = vector.extract_strided_slice %134 {offsets = [0, 0], sizes = [2, 16], strides = [1, 1]} : vector<2x64xf32> to vector<2x16xf32>
    %161 = arith.negf %160 : vector<2x16xf32>
    %162 = math.exp %161 : vector<2x16xf32>
    %cst_39 = arith.constant 1.000000e+00 : f32
    %163 = vector.broadcast %cst_39 : f32 to vector<2x16xf32>
    %164 = arith.addf %163, %162 : vector<2x16xf32>
    %165 = arith.divf %163, %164 : vector<2x16xf32>
    %166 = vector.extract_strided_slice %134 {offsets = [0, 16], sizes = [2, 16], strides = [1, 1]} : vector<2x64xf32> to vector<2x16xf32>
    %167 = arith.negf %166 : vector<2x16xf32>
    %168 = math.exp %167 : vector<2x16xf32>
    %cst_40 = arith.constant 1.000000e+00 : f32
    %169 = vector.broadcast %cst_40 : f32 to vector<2x16xf32>
    %170 = arith.addf %169, %168 : vector<2x16xf32>
    %171 = arith.divf %169, %170 : vector<2x16xf32>
    %172 = vector.extract_strided_slice %134 {offsets = [0, 32], sizes = [2, 16], strides = [1, 1]} : vector<2x64xf32> to vector<2x16xf32>
    %173 = math.tanh %172 : vector<2x16xf32>
    %174 = vector.extract_strided_slice %134 {offsets = [0, 48], sizes = [2, 16], strides = [1, 1]} : vector<2x64xf32> to vector<2x16xf32>
    %175 = arith.negf %174 : vector<2x16xf32>
    %176 = math.exp %175 : vector<2x16xf32>
    %cst_41 = arith.constant 1.000000e+00 : f32
    %177 = vector.broadcast %cst_41 : f32 to vector<2x16xf32>
    %178 = arith.addf %177, %176 : vector<2x16xf32>
    %179 = arith.divf %177, %178 : vector<2x16xf32>
    %180 = arith.mulf %171, %126 : vector<2x16xf32>
    %181 = arith.mulf %165, %173 : vector<2x16xf32>
    %182 = arith.addf %180, %181 : vector<2x16xf32>
    %183 = math.tanh %182 : vector<2x16xf32>
    %184 = arith.mulf %179, %183 : vector<2x16xf32>
    %185 = vector.extract_strided_slice %5 {offsets = [6, 0], sizes = [2, 64], strides = [1, 1]} : vector<16x64xf32> to vector<2x64xf32>
    %cst_42 = arith.constant dense<0.000000e+00> : vector<2x64xf32>
    %186 = tpu.matmul %159, %11, %cst_42 {dimension_numbers = #tpu.dot_dimension_numbers<[1], [0], [0], [1], [0, 0, 1, 1], [], []>} : vector<2x16xf32>, vector<16x64xf32>, vector<2x64xf32> -> vector<2x64xf32>
    %187 = arith.addf %185, %186 : vector<2x64xf32>
    %188 = vector.extract_strided_slice %10 {offsets = [8, 0], sizes = [2, 64], strides = [1, 1]} : vector<16x64xf32> to vector<2x64xf32>
    %cst_43 = arith.constant dense<0.000000e+00> : vector<2x64xf32>
    %189 = tpu.matmul %184, %12, %cst_43 {dimension_numbers = #tpu.dot_dimension_numbers<[1], [0], [0], [1], [0, 0, 1, 1], [], []>} : vector<2x16xf32>, vector<16x64xf32>, vector<2x64xf32> -> vector<2x64xf32>
    %190 = arith.addf %188, %189 : vector<2x64xf32>
    %191 = vector.extract_strided_slice %187 {offsets = [0, 0], sizes = [2, 16], strides = [1, 1]} : vector<2x64xf32> to vector<2x16xf32>
    %192 = arith.negf %191 : vector<2x16xf32>
    %193 = math.exp %192 : vector<2x16xf32>
    %cst_44 = arith.constant 1.000000e+00 : f32
    %194 = vector.broadcast %cst_44 : f32 to vector<2x16xf32>
    %195 = arith.addf %194, %193 : vector<2x16xf32>
    %196 = arith.divf %194, %195 : vector<2x16xf32>
    %197 = vector.extract_strided_slice %187 {offsets = [0, 16], sizes = [2, 16], strides = [1, 1]} : vector<2x64xf32> to vector<2x16xf32>
    %198 = arith.negf %197 : vector<2x16xf32>
    %199 = math.exp %198 : vector<2x16xf32>
    %cst_45 = arith.constant 1.000000e+00 : f32
    %200 = vector.broadcast %cst_45 : f32 to vector<2x16xf32>
    %201 = arith.addf %200, %199 : vector<2x16xf32>
    %202 = arith.divf %200, %201 : vector<2x16xf32>
    %203 = vector.extract_strided_slice %187 {offsets = [0, 32], sizes = [2, 16], strides = [1, 1]} : vector<2x64xf32> to vector<2x16xf32>
    %204 = math.tanh %203 : vector<2x16xf32>
    %205 = vector.extract_strided_slice %187 {offsets = [0, 48], sizes = [2, 16], strides = [1, 1]} : vector<2x64xf32> to vector<2x16xf32>
    %206 = arith.negf %205 : vector<2x16xf32>
    %207 = math.exp %206 : vector<2x16xf32>
    %cst_46 = arith.constant 1.000000e+00 : f32
    %208 = vector.broadcast %cst_46 : f32 to vector<2x16xf32>
    %209 = arith.addf %208, %207 : vector<2x16xf32>
    %210 = arith.divf %208, %209 : vector<2x16xf32>
    %211 = arith.mulf %202, %157 : vector<2x16xf32>
    %212 = arith.mulf %196, %204 : vector<2x16xf32>
    %213 = arith.addf %211, %212 : vector<2x16xf32>
    %214 = math.tanh %213 : vector<2x16xf32>
    %215 = arith.mulf %210, %214 : vector<2x16xf32>
    %216 = vector.extract_strided_slice %190 {offsets = [0, 0], sizes = [2, 16], strides = [1, 1]} : vector<2x64xf32> to vector<2x16xf32>
    %217 = arith.negf %216 : vector<2x16xf32>
    %218 = math.exp %217 : vector<2x16xf32>
    %cst_47 = arith.constant 1.000000e+00 : f32
    %219 = vector.broadcast %cst_47 : f32 to vector<2x16xf32>
    %220 = arith.addf %219, %218 : vector<2x16xf32>
    %221 = arith.divf %219, %220 : vector<2x16xf32>
    %222 = vector.extract_strided_slice %190 {offsets = [0, 16], sizes = [2, 16], strides = [1, 1]} : vector<2x64xf32> to vector<2x16xf32>
    %223 = arith.negf %222 : vector<2x16xf32>
    %224 = math.exp %223 : vector<2x16xf32>
    %cst_48 = arith.constant 1.000000e+00 : f32
    %225 = vector.broadcast %cst_48 : f32 to vector<2x16xf32>
    %226 = arith.addf %225, %224 : vector<2x16xf32>
    %227 = arith.divf %225, %226 : vector<2x16xf32>
    %228 = vector.extract_strided_slice %190 {offsets = [0, 32], sizes = [2, 16], strides = [1, 1]} : vector<2x64xf32> to vector<2x16xf32>
    %229 = math.tanh %228 : vector<2x16xf32>
    %230 = vector.extract_strided_slice %190 {offsets = [0, 48], sizes = [2, 16], strides = [1, 1]} : vector<2x64xf32> to vector<2x16xf32>
    %231 = arith.negf %230 : vector<2x16xf32>
    %232 = math.exp %231 : vector<2x16xf32>
    %cst_49 = arith.constant 1.000000e+00 : f32
    %233 = vector.broadcast %cst_49 : f32 to vector<2x16xf32>
    %234 = arith.addf %233, %232 : vector<2x16xf32>
    %235 = arith.divf %233, %234 : vector<2x16xf32>
    %236 = arith.mulf %227, %182 : vector<2x16xf32>
    %237 = arith.mulf %221, %229 : vector<2x16xf32>
    %238 = arith.addf %236, %237 : vector<2x16xf32>
    %239 = math.tanh %238 : vector<2x16xf32>
    %240 = arith.mulf %235, %239 : vector<2x16xf32>
    %241 = vector.extract_strided_slice %5 {offsets = [8, 0], sizes = [2, 64], strides = [1, 1]} : vector<16x64xf32> to vector<2x64xf32>
    %cst_50 = arith.constant dense<0.000000e+00> : vector<2x64xf32>
    %242 = tpu.matmul %215, %11, %cst_50 {dimension_numbers = #tpu.dot_dimension_numbers<[1], [0], [0], [1], [0, 0, 1, 1], [], []>} : vector<2x16xf32>, vector<16x64xf32>, vector<2x64xf32> -> vector<2x64xf32>
    %243 = arith.addf %241, %242 : vector<2x64xf32>
    %244 = vector.extract_strided_slice %10 {offsets = [6, 0], sizes = [2, 64], strides = [1, 1]} : vector<16x64xf32> to vector<2x64xf32>
    %cst_51 = arith.constant dense<0.000000e+00> : vector<2x64xf32>
    %245 = tpu.matmul %240, %12, %cst_51 {dimension_numbers = #tpu.dot_dimension_numbers<[1], [0], [0], [1], [0, 0, 1, 1], [], []>} : vector<2x16xf32>, vector<16x64xf32>, vector<2x64xf32> -> vector<2x64xf32>
    %246 = arith.addf %244, %245 : vector<2x64xf32>
    %247 = vector.extract_strided_slice %243 {offsets = [0, 0], sizes = [2, 16], strides = [1, 1]} : vector<2x64xf32> to vector<2x16xf32>
    %248 = arith.negf %247 : vector<2x16xf32>
    %249 = math.exp %248 : vector<2x16xf32>
    %cst_52 = arith.constant 1.000000e+00 : f32
    %250 = vector.broadcast %cst_52 : f32 to vector<2x16xf32>
    %251 = arith.addf %250, %249 : vector<2x16xf32>
    %252 = arith.divf %250, %251 : vector<2x16xf32>
    %253 = vector.extract_strided_slice %243 {offsets = [0, 16], sizes = [2, 16], strides = [1, 1]} : vector<2x64xf32> to vector<2x16xf32>
    %254 = arith.negf %253 : vector<2x16xf32>
    %255 = math.exp %254 : vector<2x16xf32>
    %cst_53 = arith.constant 1.000000e+00 : f32
    %256 = vector.broadcast %cst_53 : f32 to vector<2x16xf32>
    %257 = arith.addf %256, %255 : vector<2x16xf32>
    %258 = arith.divf %256, %257 : vector<2x16xf32>
    %259 = vector.extract_strided_slice %243 {offsets = [0, 32], sizes = [2, 16], strides = [1, 1]} : vector<2x64xf32> to vector<2x16xf32>
    %260 = math.tanh %259 : vector<2x16xf32>
    %261 = vector.extract_strided_slice %243 {offsets = [0, 48], sizes = [2, 16], strides = [1, 1]} : vector<2x64xf32> to vector<2x16xf32>
    %262 = arith.negf %261 : vector<2x16xf32>
    %263 = math.exp %262 : vector<2x16xf32>
    %cst_54 = arith.constant 1.000000e+00 : f32
    %264 = vector.broadcast %cst_54 : f32 to vector<2x16xf32>
    %265 = arith.addf %264, %263 : vector<2x16xf32>
    %266 = arith.divf %264, %265 : vector<2x16xf32>
    %267 = arith.mulf %258, %213 : vector<2x16xf32>
    %268 = arith.mulf %252, %260 : vector<2x16xf32>
    %269 = arith.addf %267, %268 : vector<2x16xf32>
    %270 = math.tanh %269 : vector<2x16xf32>
    %271 = arith.mulf %266, %270 : vector<2x16xf32>
    %272 = vector.extract_strided_slice %246 {offsets = [0, 0], sizes = [2, 16], strides = [1, 1]} : vector<2x64xf32> to vector<2x16xf32>
    %273 = arith.negf %272 : vector<2x16xf32>
    %274 = math.exp %273 : vector<2x16xf32>
    %cst_55 = arith.constant 1.000000e+00 : f32
    %275 = vector.broadcast %cst_55 : f32 to vector<2x16xf32>
    %276 = arith.addf %275, %274 : vector<2x16xf32>
    %277 = arith.divf %275, %276 : vector<2x16xf32>
    %278 = vector.extract_strided_slice %246 {offsets = [0, 16], sizes = [2, 16], strides = [1, 1]} : vector<2x64xf32> to vector<2x16xf32>
    %279 = arith.negf %278 : vector<2x16xf32>
    %280 = math.exp %279 : vector<2x16xf32>
    %cst_56 = arith.constant 1.000000e+00 : f32
    %281 = vector.broadcast %cst_56 : f32 to vector<2x16xf32>
    %282 = arith.addf %281, %280 : vector<2x16xf32>
    %283 = arith.divf %281, %282 : vector<2x16xf32>
    %284 = vector.extract_strided_slice %246 {offsets = [0, 32], sizes = [2, 16], strides = [1, 1]} : vector<2x64xf32> to vector<2x16xf32>
    %285 = math.tanh %284 : vector<2x16xf32>
    %286 = vector.extract_strided_slice %246 {offsets = [0, 48], sizes = [2, 16], strides = [1, 1]} : vector<2x64xf32> to vector<2x16xf32>
    %287 = arith.negf %286 : vector<2x16xf32>
    %288 = math.exp %287 : vector<2x16xf32>
    %cst_57 = arith.constant 1.000000e+00 : f32
    %289 = vector.broadcast %cst_57 : f32 to vector<2x16xf32>
    %290 = arith.addf %289, %288 : vector<2x16xf32>
    %291 = arith.divf %289, %290 : vector<2x16xf32>
    %292 = arith.mulf %283, %238 : vector<2x16xf32>
    %293 = arith.mulf %277, %285 : vector<2x16xf32>
    %294 = arith.addf %292, %293 : vector<2x16xf32>
    %295 = math.tanh %294 : vector<2x16xf32>
    %296 = arith.mulf %291, %295 : vector<2x16xf32>
    %297 = vector.extract_strided_slice %5 {offsets = [10, 0], sizes = [2, 64], strides = [1, 1]} : vector<16x64xf32> to vector<2x64xf32>
    %cst_58 = arith.constant dense<0.000000e+00> : vector<2x64xf32>
    %298 = tpu.matmul %271, %11, %cst_58 {dimension_numbers = #tpu.dot_dimension_numbers<[1], [0], [0], [1], [0, 0, 1, 1], [], []>} : vector<2x16xf32>, vector<16x64xf32>, vector<2x64xf32> -> vector<2x64xf32>
    %299 = arith.addf %297, %298 : vector<2x64xf32>
    %300 = vector.extract_strided_slice %10 {offsets = [4, 0], sizes = [2, 64], strides = [1, 1]} : vector<16x64xf32> to vector<2x64xf32>
    %cst_59 = arith.constant dense<0.000000e+00> : vector<2x64xf32>
    %301 = tpu.matmul %296, %12, %cst_59 {dimension_numbers = #tpu.dot_dimension_numbers<[1], [0], [0], [1], [0, 0, 1, 1], [], []>} : vector<2x16xf32>, vector<16x64xf32>, vector<2x64xf32> -> vector<2x64xf32>
    %302 = arith.addf %300, %301 : vector<2x64xf32>
    %303 = vector.extract_strided_slice %299 {offsets = [0, 0], sizes = [2, 16], strides = [1, 1]} : vector<2x64xf32> to vector<2x16xf32>
    %304 = arith.negf %303 : vector<2x16xf32>
    %305 = math.exp %304 : vector<2x16xf32>
    %cst_60 = arith.constant 1.000000e+00 : f32
    %306 = vector.broadcast %cst_60 : f32 to vector<2x16xf32>
    %307 = arith.addf %306, %305 : vector<2x16xf32>
    %308 = arith.divf %306, %307 : vector<2x16xf32>
    %309 = vector.extract_strided_slice %299 {offsets = [0, 16], sizes = [2, 16], strides = [1, 1]} : vector<2x64xf32> to vector<2x16xf32>
    %310 = arith.negf %309 : vector<2x16xf32>
    %311 = math.exp %310 : vector<2x16xf32>
    %cst_61 = arith.constant 1.000000e+00 : f32
    %312 = vector.broadcast %cst_61 : f32 to vector<2x16xf32>
    %313 = arith.addf %312, %311 : vector<2x16xf32>
    %314 = arith.divf %312, %313 : vector<2x16xf32>
    %315 = vector.extract_strided_slice %299 {offsets = [0, 32], sizes = [2, 16], strides = [1, 1]} : vector<2x64xf32> to vector<2x16xf32>
    %316 = math.tanh %315 : vector<2x16xf32>
    %317 = vector.extract_strided_slice %299 {offsets = [0, 48], sizes = [2, 16], strides = [1, 1]} : vector<2x64xf32> to vector<2x16xf32>
    %318 = arith.negf %317 : vector<2x16xf32>
    %319 = math.exp %318 : vector<2x16xf32>
    %cst_62 = arith.constant 1.000000e+00 : f32
    %320 = vector.broadcast %cst_62 : f32 to vector<2x16xf32>
    %321 = arith.addf %320, %319 : vector<2x16xf32>
    %322 = arith.divf %320, %321 : vector<2x16xf32>
    %323 = arith.mulf %314, %269 : vector<2x16xf32>
    %324 = arith.mulf %308, %316 : vector<2x16xf32>
    %325 = arith.addf %323, %324 : vector<2x16xf32>
    %326 = math.tanh %325 : vector<2x16xf32>
    %327 = arith.mulf %322, %326 : vector<2x16xf32>
    %328 = vector.extract_strided_slice %302 {offsets = [0, 0], sizes = [2, 16], strides = [1, 1]} : vector<2x64xf32> to vector<2x16xf32>
    %329 = arith.negf %328 : vector<2x16xf32>
    %330 = math.exp %329 : vector<2x16xf32>
    %cst_63 = arith.constant 1.000000e+00 : f32
    %331 = vector.broadcast %cst_63 : f32 to vector<2x16xf32>
    %332 = arith.addf %331, %330 : vector<2x16xf32>
    %333 = arith.divf %331, %332 : vector<2x16xf32>
    %334 = vector.extract_strided_slice %302 {offsets = [0, 16], sizes = [2, 16], strides = [1, 1]} : vector<2x64xf32> to vector<2x16xf32>
    %335 = arith.negf %334 : vector<2x16xf32>
    %336 = math.exp %335 : vector<2x16xf32>
    %cst_64 = arith.constant 1.000000e+00 : f32
    %337 = vector.broadcast %cst_64 : f32 to vector<2x16xf32>
    %338 = arith.addf %337, %336 : vector<2x16xf32>
    %339 = arith.divf %337, %338 : vector<2x16xf32>
    %340 = vector.extract_strided_slice %302 {offsets = [0, 32], sizes = [2, 16], strides = [1, 1]} : vector<2x64xf32> to vector<2x16xf32>
    %341 = math.tanh %340 : vector<2x16xf32>
    %342 = vector.extract_strided_slice %302 {offsets = [0, 48], sizes = [2, 16], strides = [1, 1]} : vector<2x64xf32> to vector<2x16xf32>
    %343 = arith.negf %342 : vector<2x16xf32>
    %344 = math.exp %343 : vector<2x16xf32>
    %cst_65 = arith.constant 1.000000e+00 : f32
    %345 = vector.broadcast %cst_65 : f32 to vector<2x16xf32>
    %346 = arith.addf %345, %344 : vector<2x16xf32>
    %347 = arith.divf %345, %346 : vector<2x16xf32>
    %348 = arith.mulf %339, %294 : vector<2x16xf32>
    %349 = arith.mulf %333, %341 : vector<2x16xf32>
    %350 = arith.addf %348, %349 : vector<2x16xf32>
    %351 = math.tanh %350 : vector<2x16xf32>
    %352 = arith.mulf %347, %351 : vector<2x16xf32>
    %353 = vector.extract_strided_slice %5 {offsets = [12, 0], sizes = [2, 64], strides = [1, 1]} : vector<16x64xf32> to vector<2x64xf32>
    %cst_66 = arith.constant dense<0.000000e+00> : vector<2x64xf32>
    %354 = tpu.matmul %327, %11, %cst_66 {dimension_numbers = #tpu.dot_dimension_numbers<[1], [0], [0], [1], [0, 0, 1, 1], [], []>} : vector<2x16xf32>, vector<16x64xf32>, vector<2x64xf32> -> vector<2x64xf32>
    %355 = arith.addf %353, %354 : vector<2x64xf32>
    %356 = vector.extract_strided_slice %10 {offsets = [2, 0], sizes = [2, 64], strides = [1, 1]} : vector<16x64xf32> to vector<2x64xf32>
    %cst_67 = arith.constant dense<0.000000e+00> : vector<2x64xf32>
    %357 = tpu.matmul %352, %12, %cst_67 {dimension_numbers = #tpu.dot_dimension_numbers<[1], [0], [0], [1], [0, 0, 1, 1], [], []>} : vector<2x16xf32>, vector<16x64xf32>, vector<2x64xf32> -> vector<2x64xf32>
    %358 = arith.addf %356, %357 : vector<2x64xf32>
    %359 = vector.extract_strided_slice %355 {offsets = [0, 0], sizes = [2, 16], strides = [1, 1]} : vector<2x64xf32> to vector<2x16xf32>
    %360 = arith.negf %359 : vector<2x16xf32>
    %361 = math.exp %360 : vector<2x16xf32>
    %cst_68 = arith.constant 1.000000e+00 : f32
    %362 = vector.broadcast %cst_68 : f32 to vector<2x16xf32>
    %363 = arith.addf %362, %361 : vector<2x16xf32>
    %364 = arith.divf %362, %363 : vector<2x16xf32>
    %365 = vector.extract_strided_slice %355 {offsets = [0, 16], sizes = [2, 16], strides = [1, 1]} : vector<2x64xf32> to vector<2x16xf32>
    %366 = arith.negf %365 : vector<2x16xf32>
    %367 = math.exp %366 : vector<2x16xf32>
    %cst_69 = arith.constant 1.000000e+00 : f32
    %368 = vector.broadcast %cst_69 : f32 to vector<2x16xf32>
    %369 = arith.addf %368, %367 : vector<2x16xf32>
    %370 = arith.divf %368, %369 : vector<2x16xf32>
    %371 = vector.extract_strided_slice %355 {offsets = [0, 32], sizes = [2, 16], strides = [1, 1]} : vector<2x64xf32> to vector<2x16xf32>
    %372 = math.tanh %371 : vector<2x16xf32>
    %373 = vector.extract_strided_slice %355 {offsets = [0, 48], sizes = [2, 16], strides = [1, 1]} : vector<2x64xf32> to vector<2x16xf32>
    %374 = arith.negf %373 : vector<2x16xf32>
    %375 = math.exp %374 : vector<2x16xf32>
    %cst_70 = arith.constant 1.000000e+00 : f32
    %376 = vector.broadcast %cst_70 : f32 to vector<2x16xf32>
    %377 = arith.addf %376, %375 : vector<2x16xf32>
    %378 = arith.divf %376, %377 : vector<2x16xf32>
    %379 = arith.mulf %370, %325 : vector<2x16xf32>
    %380 = arith.mulf %364, %372 : vector<2x16xf32>
    %381 = arith.addf %379, %380 : vector<2x16xf32>
    %382 = math.tanh %381 : vector<2x16xf32>
    %383 = arith.mulf %378, %382 : vector<2x16xf32>
    %384 = vector.extract_strided_slice %358 {offsets = [0, 0], sizes = [2, 16], strides = [1, 1]} : vector<2x64xf32> to vector<2x16xf32>
    %385 = arith.negf %384 : vector<2x16xf32>
    %386 = math.exp %385 : vector<2x16xf32>
    %cst_71 = arith.constant 1.000000e+00 : f32
    %387 = vector.broadcast %cst_71 : f32 to vector<2x16xf32>
    %388 = arith.addf %387, %386 : vector<2x16xf32>
    %389 = arith.divf %387, %388 : vector<2x16xf32>
    %390 = vector.extract_strided_slice %358 {offsets = [0, 16], sizes = [2, 16], strides = [1, 1]} : vector<2x64xf32> to vector<2x16xf32>
    %391 = arith.negf %390 : vector<2x16xf32>
    %392 = math.exp %391 : vector<2x16xf32>
    %cst_72 = arith.constant 1.000000e+00 : f32
    %393 = vector.broadcast %cst_72 : f32 to vector<2x16xf32>
    %394 = arith.addf %393, %392 : vector<2x16xf32>
    %395 = arith.divf %393, %394 : vector<2x16xf32>
    %396 = vector.extract_strided_slice %358 {offsets = [0, 32], sizes = [2, 16], strides = [1, 1]} : vector<2x64xf32> to vector<2x16xf32>
    %397 = math.tanh %396 : vector<2x16xf32>
    %398 = vector.extract_strided_slice %358 {offsets = [0, 48], sizes = [2, 16], strides = [1, 1]} : vector<2x64xf32> to vector<2x16xf32>
    %399 = arith.negf %398 : vector<2x16xf32>
    %400 = math.exp %399 : vector<2x16xf32>
    %cst_73 = arith.constant 1.000000e+00 : f32
    %401 = vector.broadcast %cst_73 : f32 to vector<2x16xf32>
    %402 = arith.addf %401, %400 : vector<2x16xf32>
    %403 = arith.divf %401, %402 : vector<2x16xf32>
    %404 = arith.mulf %395, %350 : vector<2x16xf32>
    %405 = arith.mulf %389, %397 : vector<2x16xf32>
    %406 = arith.addf %404, %405 : vector<2x16xf32>
    %407 = math.tanh %406 : vector<2x16xf32>
    %408 = arith.mulf %403, %407 : vector<2x16xf32>
    %409 = vector.extract_strided_slice %5 {offsets = [14, 0], sizes = [2, 64], strides = [1, 1]} : vector<16x64xf32> to vector<2x64xf32>
    %cst_74 = arith.constant dense<0.000000e+00> : vector<2x64xf32>
    %410 = tpu.matmul %383, %11, %cst_74 {dimension_numbers = #tpu.dot_dimension_numbers<[1], [0], [0], [1], [0, 0, 1, 1], [], []>} : vector<2x16xf32>, vector<16x64xf32>, vector<2x64xf32> -> vector<2x64xf32>
    %411 = arith.addf %409, %410 : vector<2x64xf32>
    %412 = vector.extract_strided_slice %10 {offsets = [0, 0], sizes = [2, 64], strides = [1, 1]} : vector<16x64xf32> to vector<2x64xf32>
    %cst_75 = arith.constant dense<0.000000e+00> : vector<2x64xf32>
    %413 = tpu.matmul %408, %12, %cst_75 {dimension_numbers = #tpu.dot_dimension_numbers<[1], [0], [0], [1], [0, 0, 1, 1], [], []>} : vector<2x16xf32>, vector<16x64xf32>, vector<2x64xf32> -> vector<2x64xf32>
    %414 = arith.addf %412, %413 : vector<2x64xf32>
    %415 = vector.extract_strided_slice %411 {offsets = [0, 0], sizes = [2, 16], strides = [1, 1]} : vector<2x64xf32> to vector<2x16xf32>
    %416 = arith.negf %415 : vector<2x16xf32>
    %417 = math.exp %416 : vector<2x16xf32>
    %cst_76 = arith.constant 1.000000e+00 : f32
    %418 = vector.broadcast %cst_76 : f32 to vector<2x16xf32>
    %419 = arith.addf %418, %417 : vector<2x16xf32>
    %420 = arith.divf %418, %419 : vector<2x16xf32>
    %421 = vector.extract_strided_slice %411 {offsets = [0, 16], sizes = [2, 16], strides = [1, 1]} : vector<2x64xf32> to vector<2x16xf32>
    %422 = arith.negf %421 : vector<2x16xf32>
    %423 = math.exp %422 : vector<2x16xf32>
    %cst_77 = arith.constant 1.000000e+00 : f32
    %424 = vector.broadcast %cst_77 : f32 to vector<2x16xf32>
    %425 = arith.addf %424, %423 : vector<2x16xf32>
    %426 = arith.divf %424, %425 : vector<2x16xf32>
    %427 = vector.extract_strided_slice %411 {offsets = [0, 32], sizes = [2, 16], strides = [1, 1]} : vector<2x64xf32> to vector<2x16xf32>
    %428 = math.tanh %427 : vector<2x16xf32>
    %429 = vector.extract_strided_slice %411 {offsets = [0, 48], sizes = [2, 16], strides = [1, 1]} : vector<2x64xf32> to vector<2x16xf32>
    %430 = arith.negf %429 : vector<2x16xf32>
    %431 = math.exp %430 : vector<2x16xf32>
    %cst_78 = arith.constant 1.000000e+00 : f32
    %432 = vector.broadcast %cst_78 : f32 to vector<2x16xf32>
    %433 = arith.addf %432, %431 : vector<2x16xf32>
    %434 = arith.divf %432, %433 : vector<2x16xf32>
    %435 = arith.mulf %426, %381 : vector<2x16xf32>
    %436 = arith.mulf %420, %428 : vector<2x16xf32>
    %437 = arith.addf %435, %436 : vector<2x16xf32>
    %438 = math.tanh %437 : vector<2x16xf32>
    %439 = arith.mulf %434, %438 : vector<2x16xf32>
    %440 = vector.extract_strided_slice %414 {offsets = [0, 0], sizes = [2, 16], strides = [1, 1]} : vector<2x64xf32> to vector<2x16xf32>
    %441 = arith.negf %440 : vector<2x16xf32>
    %442 = math.exp %441 : vector<2x16xf32>
    %cst_79 = arith.constant 1.000000e+00 : f32
    %443 = vector.broadcast %cst_79 : f32 to vector<2x16xf32>
    %444 = arith.addf %443, %442 : vector<2x16xf32>
    %445 = arith.divf %443, %444 : vector<2x16xf32>
    %446 = vector.extract_strided_slice %414 {offsets = [0, 16], sizes = [2, 16], strides = [1, 1]} : vector<2x64xf32> to vector<2x16xf32>
    %447 = arith.negf %446 : vector<2x16xf32>
    %448 = math.exp %447 : vector<2x16xf32>
    %cst_80 = arith.constant 1.000000e+00 : f32
    %449 = vector.broadcast %cst_80 : f32 to vector<2x16xf32>
    %450 = arith.addf %449, %448 : vector<2x16xf32>
    %451 = arith.divf %449, %450 : vector<2x16xf32>
    %452 = vector.extract_strided_slice %414 {offsets = [0, 32], sizes = [2, 16], strides = [1, 1]} : vector<2x64xf32> to vector<2x16xf32>
    %453 = math.tanh %452 : vector<2x16xf32>
    %454 = vector.extract_strided_slice %414 {offsets = [0, 48], sizes = [2, 16], strides = [1, 1]} : vector<2x64xf32> to vector<2x16xf32>
    %455 = arith.negf %454 : vector<2x16xf32>
    %456 = math.exp %455 : vector<2x16xf32>
    %cst_81 = arith.constant 1.000000e+00 : f32
    %457 = vector.broadcast %cst_81 : f32 to vector<2x16xf32>
    %458 = arith.addf %457, %456 : vector<2x16xf32>
    %459 = arith.divf %457, %458 : vector<2x16xf32>
    %460 = arith.mulf %451, %406 : vector<2x16xf32>
    %461 = arith.mulf %445, %453 : vector<2x16xf32>
    %462 = arith.addf %460, %461 : vector<2x16xf32>
    %463 = math.tanh %462 : vector<2x16xf32>
    %464 = arith.mulf %459, %463 : vector<2x16xf32>
    %465 = tpu.concatenate %47, %103, %159, %215, %271, %327, %383, %439 in 0 : vector<2x16xf32>, vector<2x16xf32>, vector<2x16xf32>, vector<2x16xf32>, vector<2x16xf32>, vector<2x16xf32>, vector<2x16xf32>, vector<2x16xf32> -> vector<16x16xf32>
    %466 = tpu.concatenate %464, %408, %352, %296, %240, %184, %128, %72 in 0 : vector<2x16xf32>, vector<2x16xf32>, vector<2x16xf32>, vector<2x16xf32>, vector<2x16xf32>, vector<2x16xf32>, vector<2x16xf32>, vector<2x16xf32> -> vector<16x16xf32>
    %c0_82 = arith.constant 0 : index
    %c0_83 = arith.constant 0 : index
    %467 = vector.load %arg8[%c0_82, %c0_83] : memref<16x32xf32, #tpu.memory_space<vmem>>, vector<16x32xf32>
    %cst_84 = arith.constant dense<0.000000e+00> : vector<16x32xf32>
    %468 = tpu.matmul %465, %467, %cst_84 {dimension_numbers = #tpu.dot_dimension_numbers<[1], [0], [0], [1], [0, 0, 1, 1], [], []>} : vector<16x16xf32>, vector<16x32xf32>, vector<16x32xf32> -> vector<16x32xf32>
    %c0_85 = arith.constant 0 : index
    %c0_86 = arith.constant 0 : index
    %469 = vector.load %arg9[%c0_85, %c0_86] : memref<16x32xf32, #tpu.memory_space<vmem>>, vector<16x32xf32>
    %cst_87 = arith.constant dense<0.000000e+00> : vector<16x32xf32>
    %470 = tpu.matmul %466, %469, %cst_87 {dimension_numbers = #tpu.dot_dimension_numbers<[1], [0], [0], [1], [0, 0, 1, 1], [], []>} : vector<16x16xf32>, vector<16x32xf32>, vector<16x32xf32> -> vector<16x32xf32>
    %471 = arith.addf %468, %470 : vector<16x32xf32>
    %c0_88 = arith.constant 0 : index
    %c0_89 = arith.constant 0 : index
    %472 = vector.load %arg10[%c0_88, %c0_89] : memref<16x32xf32, #tpu.memory_space<vmem>>, vector<16x32xf32>
    %cst_90 = arith.constant dense<0.000000e+00> : vector<16x32xf32>
    %473 = tpu.matmul %0, %472, %cst_90 {dimension_numbers = #tpu.dot_dimension_numbers<[1], [0], [0], [1], [0, 0, 1, 1], [], []>} : vector<16x16xf32>, vector<16x32xf32>, vector<16x32xf32> -> vector<16x32xf32>
    %474 = arith.addf %471, %473 : vector<16x32xf32>
    %c0_91 = arith.constant 0 : index
    %c0_92 = arith.constant 0 : index
    %475 = vector.load %arg11[%c0_91, %c0_92] : memref<1x32xf32, #tpu.memory_space<vmem>>, vector<1x32xf32>
    %476 = vector.broadcast %475 : vector<1x32xf32> to vector<16x32xf32>
    %477 = arith.addf %474, %476 : vector<16x32xf32>
    %cst_93 = arith.constant 0.000000e+00 : f32
    %478 = vector.broadcast %cst_93 : f32 to vector<16x32xf32>
    %479 = arith.maximumf %477, %478 : vector<16x32xf32>
    %480 = vector.extract_strided_slice %479 {offsets = [0, 0], sizes = [2, 32], strides = [1, 1]} : vector<16x32xf32> to vector<2x32xf32>
    %481 = vector.extract_strided_slice %479 {offsets = [2, 0], sizes = [2, 32], strides = [1, 1]} : vector<16x32xf32> to vector<2x32xf32>
    %482 = arith.maximumf %480, %481 : vector<2x32xf32>
    %483 = vector.extract_strided_slice %479 {offsets = [4, 0], sizes = [2, 32], strides = [1, 1]} : vector<16x32xf32> to vector<2x32xf32>
    %484 = arith.maximumf %482, %483 : vector<2x32xf32>
    %485 = vector.extract_strided_slice %479 {offsets = [6, 0], sizes = [2, 32], strides = [1, 1]} : vector<16x32xf32> to vector<2x32xf32>
    %486 = arith.maximumf %484, %485 : vector<2x32xf32>
    %487 = vector.extract_strided_slice %479 {offsets = [8, 0], sizes = [2, 32], strides = [1, 1]} : vector<16x32xf32> to vector<2x32xf32>
    %488 = arith.maximumf %486, %487 : vector<2x32xf32>
    %489 = vector.extract_strided_slice %479 {offsets = [10, 0], sizes = [2, 32], strides = [1, 1]} : vector<16x32xf32> to vector<2x32xf32>
    %490 = arith.maximumf %488, %489 : vector<2x32xf32>
    %491 = vector.extract_strided_slice %479 {offsets = [12, 0], sizes = [2, 32], strides = [1, 1]} : vector<16x32xf32> to vector<2x32xf32>
    %492 = arith.maximumf %490, %491 : vector<2x32xf32>
    %493 = vector.extract_strided_slice %479 {offsets = [14, 0], sizes = [2, 32], strides = [1, 1]} : vector<16x32xf32> to vector<2x32xf32>
    %494 = arith.maximumf %492, %493 : vector<2x32xf32>
    %c0_94 = arith.constant 0 : index
    %c0_95 = arith.constant 0 : index
    %495 = vector.load %arg12[%c0_94, %c0_95] : memref<32x4xf32, #tpu.memory_space<vmem>>, vector<32x4xf32>
    %cst_96 = arith.constant dense<0.000000e+00> : vector<2x4xf32>
    %496 = tpu.matmul %494, %495, %cst_96 {dimension_numbers = #tpu.dot_dimension_numbers<[1], [0], [0], [1], [0, 0, 1, 1], [], []>} : vector<2x32xf32>, vector<32x4xf32>, vector<2x4xf32> -> vector<2x4xf32>
    %c0_97 = arith.constant 0 : index
    %c0_98 = arith.constant 0 : index
    %497 = vector.load %arg13[%c0_97, %c0_98] : memref<1x4xf32, #tpu.memory_space<vmem>>, vector<1x4xf32>
    %498 = vector.broadcast %497 : vector<1x4xf32> to vector<2x4xf32>
    %499 = arith.addf %496, %498 : vector<2x4xf32>
    %cst_99 = arith.constant dense<0xFF800000> : vector<2xf32>
    %500 = vector.multi_reduction <maximumf>, %499, %cst_99 [1] : vector<2x4xf32> to vector<2xf32>
    %501 = vector.shape_cast %500 : vector<2xf32> to vector<2x1xf32>
    %502 = vector.broadcast %501 : vector<2x1xf32> to vector<2x4xf32>
    %503 = arith.subf %499, %502 : vector<2x4xf32>
    %504 = math.exp %503 : vector<2x4xf32>
    %cst_100 = arith.constant dense<0.000000e+00> : vector<2xf32>
    %505 = vector.multi_reduction <add>, %504, %cst_100 [1] : vector<2x4xf32> to vector<2xf32>
    %506 = vector.shape_cast %505 : vector<2xf32> to vector<2x1xf32>
    %507 = math.log %506 : vector<2x1xf32>
    %508 = vector.broadcast %507 : vector<2x1xf32> to vector<2x4xf32>
    %509 = arith.subf %503, %508 : vector<2x4xf32>
    %c0_101 = arith.constant 0 : index
    %c0_102 = arith.constant 0 : index
    %510 = vector.load %arg14[%c0_101, %c0_102] : memref<2x4xf32, #tpu.memory_space<vmem>>, vector<2x4xf32>
    tpu.vector_store %arg14[%c0_101, %c0_102], %509 {strides = array<i32>} : memref<2x4xf32, #tpu.memory_space<vmem>>, vector<2x4xf32>,
    return
  }
  func.func @transform_0(%arg0: i32) -> (i32, i32) {
    %c0_i32 = arith.constant 0 : i32
    %c0_i32_0 = arith.constant 0 : i32
    %c0_i32_1 = arith.constant 0 : i32
    return %c0_i32, %c0_i32_0 : i32, i32
  }
  func.func @transform_1(%arg0: i32) -> (i32, i32) {
    %c0_i32 = arith.constant 0 : i32
    %c0_i32_0 = arith.constant 0 : i32
    %c0_i32_1 = arith.constant 0 : i32
    return %c0_i32, %c0_i32_0 : i32, i32
  }
  func.func @transform_2(%arg0: i32) -> (i32, i32) {
    %c0_i32 = arith.constant 0 : i32
    %c0_i32_0 = arith.constant 0 : i32
    %c0_i32_1 = arith.constant 0 : i32
    return %c0_i32, %c0_i32_0 : i32, i32
  }
  func.func @transform_3(%arg0: i32) -> (i32, i32) {
    %c0_i32 = arith.constant 0 : i32
    %c0_i32_0 = arith.constant 0 : i32
    %c0_i32_1 = arith.constant 0 : i32
    return %c0_i32, %c0_i32_0 : i32, i32
  }
  func.func @transform_4(%arg0: i32) -> (i32, i32) {
    %c0_i32 = arith.constant 0 : i32
    %c0_i32_0 = arith.constant 0 : i32
    %c0_i32_1 = arith.constant 0 : i32
    return %c0_i32, %c0_i32_0 : i32, i32
  }
  func.func @transform_5(%arg0: i32) -> (i32, i32) {
    %c0_i32 = arith.constant 0 : i32
    %c0_i32_0 = arith.constant 0 : i32
    %c0_i32_1 = arith.constant 0 : i32
    return %c0_i32, %c0_i32_0 : i32, i32
  }
  func.func @transform_6(%arg0: i32) -> (i32, i32) {
    %c0_i32 = arith.constant 0 : i32
    %c0_i32_0 = arith.constant 0 : i32
    %c0_i32_1 = arith.constant 0 : i32
    return %c0_i32, %c0_i32_0 : i32, i32
  }
  func.func @transform_7(%arg0: i32) -> (i32, i32) {
    %c0_i32 = arith.constant 0 : i32
    %c0_i32_0 = arith.constant 0 : i32
    %c0_i32_1 = arith.constant 0 : i32
    return %c0_i32, %c0_i32_0 : i32, i32
  }
  func.func @transform_8(%arg0: i32) -> (i32, i32) {
    %c0_i32 = arith.constant 0 : i32
    %c0_i32_0 = arith.constant 0 : i32
    %c0_i32_1 = arith.constant 0 : i32
    return %c0_i32, %c0_i32_0 : i32, i32
  }
  func.func @transform_9(%arg0: i32) -> (i32, i32) {
    %c0_i32 = arith.constant 0 : i32
    %c0_i32_0 = arith.constant 0 : i32
    %c0_i32_1 = arith.constant 0 : i32
    return %c0_i32, %c0_i32_0 : i32, i32
  }
  func.func @transform_10(%arg0: i32) -> (i32, i32) {
    %c0_i32 = arith.constant 0 : i32
    %c0_i32_0 = arith.constant 0 : i32
    %c0_i32_1 = arith.constant 0 : i32
    return %c0_i32, %c0_i32_0 : i32, i32
  }
  func.func @transform_11(%arg0: i32) -> (i32, i32) {
    %c0_i32 = arith.constant 0 : i32
    %c0_i32_0 = arith.constant 0 : i32
    %c0_i32_1 = arith.constant 0 : i32
    return %c0_i32, %c0_i32_0 : i32, i32
  }
  func.func @transform_12(%arg0: i32) -> (i32, i32) {
    %c0_i32 = arith.constant 0 : i32
    %c0_i32_0 = arith.constant 0 : i32
    %c0_i32_1 = arith.constant 0 : i32
    return %c0_i32, %c0_i32_0 : i32, i32
  }
  func.func @transform_13(%arg0: i32) -> (i32, i32) {
    %c0_i32 = arith.constant 0 : i32
    %c0_i32_0 = arith.constant 0 : i32
    %c0_i32_1 = arith.constant 0 : i32
    return %c0_i32, %c0_i32_0 : i32, i32
  }
}

</mosaic_0001>

<bundles_post_ra>
// kernel: tpu_custom_call.1
= control target key start
LH: loop header
LB: loop body
LE: loop exit
PB: predicated region body
PF: predicated region fallthrough
CT: control target
= control target key end

     0   :  { %18 = vsyncpa [#allocation3], 0  ;;  %s3503_s0 = inlined_call_operand.vmem [shape: f32[16,16], index: 0, kind: input, shape index: {}]   ;;  %s3504_s1 = inlined_call_operand.vmem [shape: f32[16,64], index: 1, kind: input, shape index: {}]   ;;  %s3505_s2 = inlined_call_operand.hbm [shape: f32[16,64], index: 2, kind: input, shape index: {}]   ;;  %s3506_s3 = inlined_call_operand.vmem [shape: f32[1,64], index: 3, kind: input, shape index: {}]   ;;  %s3507_s4 = inlined_call_operand.vmem [shape: f32[16,64], index: 4, kind: input, shape index: {}]   ;;  %s3508_s5 = inlined_call_operand.hbm [shape: f32[16,64], index: 5, kind: input, shape index: {}]   ;;  %s3509_s6 = inlined_call_operand.vmem [shape: f32[1,64], index: 6, kind: input, shape index: {}]   ;;  %s3510_s7 = inlined_call_operand.hbm [shape: f32[16,32], index: 7, kind: input, shape index: {}]   ;;  %s3511_s8 = inlined_call_operand.vmem [shape: f32[16,32], index: 8, kind: input, shape index: {}]   ;;  %s3512_s9 = inlined_call_operand.hbm [shape: f32[16,32], index: 9, kind: input, shape index: {}]   ;;  %s3513_s10 = inlined_call_operand.vmem [shape: f32[1,32], index: 10, kind: input, shape index: {}]   ;;  %s3514_s11 = inlined_call_operand.vmem [shape: f32[32,4], index: 11, kind: input, shape index: {}]   ;;  %s3515_s12 = inlined_call_operand.vmem [shape: f32[1,4], index: 12, kind: input, shape index: {}]   ;;  %s3516_s13 = inlined_call_operand.hbm [shape: f32[2,4], index: 13, kind: output, shape index: {}]  }
   0x1   :  { %19 = vsyncpa [#allocation6], 0 }
   0x2   :  { %20 = vsyncpa [#allocation9], 0 }
   0x3   :  { %21 = vsyncpa [#allocation4], 0  ;;  %s2999_s25 = smov [#allocation5]   ;;  %s3000_s27 = smov [#allocation2]  }
   0x4   :  { %s47_s26 = sshll.u32 %s2999_s25, 4  ;;  %s31_s28 = sshll.u32 %s3000_s27, 4  ;;  %s48_s26 = int_to_ptr.vmem [resolvable:$true] %s47_s26  ;;  %s3083_s28 = int_to_ptr.vmem [resolvable:$true] %s31_s28 }
   0x5   :  { %s2881_s14 = scalar_lea.hbm %s3508_s5, 256 }
   0x6   :  { %p2882_p0 = scmp.ne.s32.totalorder %s3508_s5, %s2881_s14  ;;  %p2885_p1 = scmp.lt.u32.totalorder %s2881_s14, %s3508_s5 }
   0x8   :  { %p2887_p2 = pnand %p2885_p1, %p2882_p0 }
   0xa   :  { %2890 = shalt.err (!%p2887_p2)
}
   0xb   :  { %s2891_s19 = scalar_lea.vmem %s48_s26, 256  ;;  %p2896_p4 = scmp.lt.s32.totalorder %s48_s26, %s48_s26 }
   0xc   :  { %p2892_p3 = scmp.ne.s32.totalorder %s48_s26, %s2891_s19  ;;  %p2897_p5 = scmp.lt.s32.totalorder %s2891_s19, %s2891_s19 }
   0xe   :  { %p2898_p6 = por %p2897_p5, %p2896_p4 }
  0x10   :  { %p2899_p7 = pnand %p2898_p6, %p2892_p3 }
  0x12   :  { %2902 = shalt.err (!%p2899_p7)
}
  0x13   :  { %s3001_s20 = smov 128   ;;  %s3002_s21 = smov 8  }
  0x14   :  { %53 = dma.hbm_to_vmem [thread:$0]  %s3508_s5, 256, %s48_s26, [#allocation6], %s3001_s20, %s3001_s20, %s3002_s21  }
  0x15   :  { %s2903_s27 = scalar_lea.hbm %s3505_s2, 256 }
  0x16   :  { %p2904_p8 = scmp.ne.s32.totalorder %s3505_s2, %s2903_s27  ;;  %p2907_p9 = scmp.lt.u32.totalorder %s2903_s27, %s3505_s2 }
  0x18   :  { %p2909_p10 = pnand %p2907_p9, %p2904_p8 }
  0x1a   :  { %2912 = shalt.err (!%p2909_p10)
}
  0x1b   :  { %s2913_s16 = scalar_lea.vmem %s3083_s28, 256  ;;  %p2918_p12 = scmp.lt.s32.totalorder %s3083_s28, %s3083_s28 }
  0x1c   :  { %p2914_p11 = scmp.ne.s32.totalorder %s3083_s28, %s2913_s16  ;;  %p2919_p13 = scmp.lt.s32.totalorder %s2913_s16, %s2913_s16 }
  0x1e   :  { %p2920_p0 = por %p2919_p13, %p2918_p12 }
  0x20   :  { %p2921_p1 = pnand %p2920_p0, %p2914_p11 }
  0x22   :  { %2924 = shalt.err (!%p2921_p1)
}
  0x23   :  { %37 = dma.hbm_to_vmem [thread:$0]  %s3505_s2, 256, %s3083_s28, [#allocation3], %s3001_s20, %s3001_s20, %s3002_s21  }
  0x24   :  { %s3003_s17 = smov [#allocation7]   ;;  %s3004_s19 = smov [#allocation8]  }
  0x25   :  { %s61_s18 = sshll.u32 %s3003_s17, 4  ;;  %s75_s22 = sshll.u32 %s3004_s19, 4  ;;  %s62_s18 = int_to_ptr.vmem [resolvable:$true] %s61_s18  ;;  %s3120_s22 = int_to_ptr.vmem [resolvable:$true] %s75_s22 }
  0x26   :  { %s2925_s25 = scalar_lea.hbm %s3510_s7, 256 }
  0x27   :  { %p2926_p2 = scmp.ne.s32.totalorder %s3510_s7, %s2925_s25  ;;  %p2929_p3 = scmp.lt.u32.totalorder %s2925_s25, %s3510_s7 }
  0x29   :  { %p2931_p4 = pnand %p2929_p3, %p2926_p2 }
  0x2b   :  { %2934 = shalt.err (!%p2931_p4)
}
  0x2c   :  { %s2935_s2 = scalar_lea.vmem %s62_s18, 256  ;;  %p2940_p6 = scmp.lt.s32.totalorder %s62_s18, %s62_s18 }
  0x2d   :  { %p2936_p5 = scmp.ne.s32.totalorder %s62_s18, %s2935_s2  ;;  %p2941_p7 = scmp.lt.s32.totalorder %s2935_s2, %s2935_s2 }
  0x2f   :  { %p2942_p8 = por %p2941_p7, %p2940_p6 }
  0x31   :  { %p2943_p9 = pnand %p2942_p8, %p2936_p5 }
  0x33   :  { %2946 = shalt.err (!%p2943_p9)
}
  0x34   :  { %67 = dma.hbm_to_vmem [thread:$0]  %s3510_s7, 256, %s62_s18, [#allocation6], %s3001_s20, %s3001_s20, %s3002_s21  }
  0x35   :  { %s2947_s26 = scalar_lea.hbm %s3512_s9, 256 }
  0x36   :  { %p2948_p10 = scmp.ne.s32.totalorder %s3512_s9, %s2947_s26  ;;  %p2951_p11 = scmp.lt.u32.totalorder %s2947_s26, %s3512_s9 }
  0x38   :  { %p2953_p12 = pnand %p2951_p11, %p2948_p10 }
  0x3a   :  { %2956 = shalt.err (!%p2953_p12)
}
  0x3b   :  { %s2957_s25 = scalar_lea.vmem %s3120_s22, 256  ;;  %p2962_p0 = scmp.lt.s32.totalorder %s3120_s22, %s3120_s22 }
  0x3c   :  { %p2958_p13 = scmp.ne.s32.totalorder %s3120_s22, %s2957_s25  ;;  %p2963_p1 = scmp.lt.s32.totalorder %s2957_s25, %s2957_s25 }
  0x3e   :  { %p2964_p2 = por %p2963_p1, %p2962_p0 }
  0x40   :  { %p2965_p3 = pnand %p2964_p2, %p2958_p13 }
  0x42   :  { %2968 = shalt.err (!%p2965_p3)
}
  0x43   :  { %81 = dma.hbm_to_vmem [thread:$0]  %s3512_s9, 256, %s3120_s22, [#allocation9], %s3001_s20, %s3001_s20, %s3002_s21  }
  0x44   :  { %2991 = dma.done.wait [#allocation3], 256  }
  0x45   :  { %2992 = vsyncadd [#allocation3], 4294967040 }
  0x46   :  { %2993 = dma.done.wait [#allocation6], 512  }
  0x47   :  { %2994 = vsyncadd [#allocation6], 4294966784 }
  0x48   :  { %2995 = dma.done.wait [#allocation9], 256  }
  0x49   :  { %2996 = vsyncadd [#allocation9], 4294967040  ;;  %vm111_vm0 = vcmask 130048   ;;  %v193_v0 = vld [vmem:[%s3507_s4] sm:$0xff]  ;;  %v194_v1 = vld [vmem:[%s3507_s4 + $0x8] sm:$0xff]  ;;  %v3005_v13 = vmov 0.0|0.0  }
  0x4a   :  { %v100_v2 = vld [vmem:[%s3503_s0] sm:$0xff]  ;;  %v2659_v3 = vpack.c.bf16 %v194_v1, %v193_v0  ;;  %v279_v4 = vld [vmem:[#allocation5] sm:$0xff]  ;;  %v280_v5 = vld [vmem:[#allocation5 + $0x8] sm:$0xff]  ;;  %vm3006_vm1 = vmmov 0   ;;  %v3007_v15 = vmov 0.0   ;;  %s3010_s17 = smov 32  }
  0x4b   :  { %2508 = vmatprep.mubr.msk.f32.mxu1 %vm111_vm0, %v100_v2  ;;  %2501 = vmatprep.mubr.msk.f32.mxu0 %vm111_vm0, %v100_v2  ;;  %v102_v6 = vld [vmem:[%s3504_s1] sm:$0xff]  ;;  %v103_v7 = vld [vmem:[%s3504_s1 + $0x8] sm:$0xff]  ;;  %v3177_v12 = vpack.c.bf16 %v280_v5, %v279_v4  ;;  %s3011_s19 = smov 80   ;;  %vm1963_vm2 = vcmask 1041408   ;;  %vm1965_vm3 = vcmask 1043456   ;;  %vm1967_vm4 = vcmask 1045504  }
  0x4c   :  { %2660 = vmatprep.subr.bf16.mxu1 %v2659_v3  ;;  %v2655_v8 = vpack.c.bf16 %v103_v7, %v102_v6  ;;  %v277_v9 = vld [vmem:[#allocation2] sm:$0xff]  ;;  %v278_v10 = vld [vmem:[#allocation2 + $0x8] sm:$0xff]  ;;  %vm2274_vm5 = vcmask 261120   ;;  %vm2348_vm6 = vcmask 25600   ;;  %s3012_s15 = smov [#allocation10]  }
  0x4d   :  { %2662 = vmatpush3.bf16.msra.mxu1 %v2659_v3  ;;  %v101_v11 = vld [vmem:[%s3503_s0 + $0x8] sm:$0xff]  ;;  %v3180_v14 = vpack.c.bf16 %v278_v10, %v277_v9  ;;  %v2382_v16 = vld [vmem:[%s3509_s6] ss:$0 sm:$0xff]  ;;  %s3009_s6 = smov 16  }
  0x4e   :  { %2666 = vmatprep.subr.bf16.mxu1 %v3005_v13  ;;  %2656 = vmatprep.subr.bf16.mxu0 %v2655_v8  ;;  %v2379_v19 = vld [vmem:[%s3506_s3] ss:$0 sm:$0xff]  ;;  %s3008_s3 = smov 96  }
  0x4f   :  { %2658 = vmatpush3.bf16.msra.mxu0 %v2655_v8 }
  0x50   :  { %2509 = vmatmul.mubr.msk.f32.vlgmr.msra.gmra.mrb[0].mxu1 %vm111_vm0, %v101_v11  ;;  %2663 = vmatprep.subr.bf16.mxu0 %v3005_v13 }
  0x51   :  { %2668 = vmatpush3.bf16.msra.mxu1 %v3177_v12  ;;  %2522 = vmatprep.mubr.msk.f32.mxu1 %vm3006_vm1, %v3007_v15 }
  0x52   :  { %2502 = vmatmul.mubr.msk.f32.vlgmr.msra.gmra.mrb[0].mxu0 %vm111_vm0, %v101_v11  ;;  %2672 = vmatprep.subr.bf16.mxu1 %v3005_v13 }
  0x53   :  { %2665 = vmatpush3.bf16.msra.mxu0 %v3180_v14  ;;  %2515 = vmatprep.mubr.msk.f32.mxu0 %vm3006_vm1, %v3007_v15 }
  0x54   :  { %2523 = vmatmul.mubr.f32.vlgmr.msra.gmra.mrb[2].mxu1 %v3007_v15  ;;  %2669 = vmatprep.subr.bf16.mxu0 %v3005_v13 }
  0x55   :  { %2674 = vmatpush3.bf16.msra.mxu1 %v3177_v12  ;;  %2536 = vmatprep.mubr.msk.f32.mxu1 %vm3006_vm1, %v3007_v15 }
  0x56   :  { %2516 = vmatmul.mubr.f32.vlgmr.msra.gmra.mrb[2].mxu0 %v3007_v15  ;;  %2678 = vmatprep.subr.bf16.mxu1 %v3005_v13 }
  0x57   :  { %2671 = vmatpush3.bf16.msra.mxu0 %v3180_v14  ;;  %2529 = vmatprep.mubr.msk.f32.mxu0 %vm3006_vm1, %v3007_v15 }
  0x58   :  { %2675 = vmatprep.subr.bf16.mxu0 %v3005_v13 }
 0x123   :  { %v2510_v17 = vpop.f32.mrb[0].mxu1 }
 0x124   :  { %v268_v18 = vpop.f32.mrb[1].mxu1  ;;  %v3215_v26 = vadd.f32 %v2510_v17, %v2382_v16 }
 0x125   :  { %v3209_v20 = vadd.f32 %v2382_v16, %v268_v18  ;;  %v2503_v21 = vpop.f32.mrb[0].mxu0 }
 0x126   :  { %v3211_v22 = vadd.f32 %v2503_v21, %v2379_v19  ;;  %v184_v23 = vpop.f32.mrb[1].mxu0 }
 0x127   :  { %v421_v24 = vpop.f32.mrb[2].mxu1  ;;  %v3213_v25 = vadd.f32 %v2379_v19, %v184_v23 }
 0x128   :  { %v426_v27 = vrot.slane %v421_v24, 2  ;;  %v2524_v28 = vpop.f32.mrb[3].mxu1 }
 0x129   :  { %v350_v29 = vpop.f32.mrb[2].mxu0 }
 0x12a   :  { %v428_v30 = vadd.f32 %v426_v27, %v3215_v26  ;;  %v354_v31 = vadd.f32 %v350_v29, %v3213_v25  ;;  %v2517_v32 = vpop.f32.mrb[3].mxu0 }
 0x12c   :  { %2747 = vtanh.f32 %v428_v30  ;;  %v2386_v35 = vmul.f32 -1.442695, %v428_v30  ;;  %v2385_v36 = vmul.f32 -1.442695, %v354_v31 }
 0x12d   :  { %2749 = vtanh.f32 %v354_v31 }
 0x12e   :  { %2751 = vpow2.f32 %v2386_v35 }
 0x12f   :  { %2753 = vpow2.f32 %v2385_v36 }
 0x136   :  { %v2748_v33 = vpop.eup %2747 }
 0x137   :  { %462 = vrot.lane.b32.xlu0 %v2748_v33, %s3008_s3  ;;  %v2750_v34 = vpop.eup %2749 }
 0x138   :  { %v2752_v37 = vpop.eup %2751 }
 0x139   :  { %v456_v38 = vadd.f32 1.0, %v2752_v37  ;;  %v2754_v39 = vpop.eup %2753 }
 0x13a   :  { %v432_v40 = vadd.f32 1.0, %v2754_v39 }
 0x13b   :  { %438 = vrot.lane.b32.xlu0 %v2750_v34, %s3008_s3  ;;  %2755 = vrcp.f32 %v456_v38 }
 0x13c   :  { %2757 = vrcp.f32 %v432_v40 }
 0x145   :  { %v2756_v41 = vpop.eup %2755 }
 0x146   :  { %v2758_v44 = vpop.eup %2757  ;;  %v460_v47 = vmul.f32 0.0, %v2756_v41 }
 0x147   :  { %v436_v50 = vmul.f32 0.0, %v2758_v44 }
 0x1a9   :  { %v463_v42 = vpop.permute.xlu0 %462 }
 0x1aa   :  { %v465_v43 = vmul.f32 %v2756_v41, %v463_v42 }
 0x1ac   :  { %467 = vrot.lane.b32.xlu1 %v465_v43, %s3009_s6 }
 0x1ad   :  { %v439_v45 = vpop.permute.xlu0 %438 }
 0x1ae   :  { %v441_v46 = vmul.f32 %v2758_v44, %v439_v45 }
 0x1b0   :  { %443 = vrot.lane.b32.xlu1 %v441_v46, %s3009_s6 }
 0x21e   :  { %v468_v48 = vpop.permute.xlu1 %467 }
 0x21f   :  { %v3223_v49 = vadd.f32 %v468_v48, %v460_v47 }
 0x221   :  { %2759 = vtanh.f32 %v3223_v49  ;;  %v671_v28 = vrot.slane %v3223_v49, 2 }
 0x222   :  { %v444_v51 = vpop.permute.xlu1 %443 }
 0x223   :  { %v3226_v52 = vadd.f32 %v444_v51, %v436_v50 }
 0x225   :  { %2761 = vtanh.f32 %v3226_v52  ;;  %v644_v30 = vrot.slane %v3226_v52, 6 }
 0x22b   :  { %v2760_v53 = vpop.eup %2759 }
 0x22c   :  { %473 = vrot.lane.b32.xlu0 %v2760_v53, %s3010_s17 }
 0x22f   :  { %v2762_v54 = vpop.eup %2761 }
 0x230   :  { %449 = vrot.lane.b32.xlu1 %v2762_v54, %s3010_s17 }
 0x29e   :  { %v474_v55 = vpop.permute.xlu0 %473 }
 0x29f   :  { %v3231_v56 = vmul.f32 %v2756_v41, %v474_v55 }
 0x2a1   :  { %v557_v57 = vrot.slane %v3231_v56, 6 }
 0x2a2   :  { %v450_v58 = vpop.permute.xlu1 %449 }
 0x2a3   :  { %v3234_v59 = vmul.f32 %v2758_v44, %v450_v58  ;;  %558 = vrot.lane.b32.xlu0 %v557_v57, %s3011_s19 }
 0x2a5   :  { %478 = vrot.lane.b32.xlu1 %v3234_v59, %s3011_s19 }
 0x315   :  { %v559_v60 = vpop.permute.xlu0 %558 }
 0x316   :  { %2537 = vmatmul.mubr.msk.f32.vlgmr.msra.gmra.mrb[4].mxu1 %vm111_vm0, %v559_v60 }
 0x317   :  { %v479_v61 = vpop.permute.xlu1 %478  ;;  %2680 = vmatpush3.bf16.msra.mxu1 %v3177_v12  ;;  %2550 = vmatprep.mubr.msk.f32.mxu1 %vm3006_vm1, %v3007_v15 }
 0x318   :  { %2530 = vmatmul.mubr.msk.f32.vlgmr.msra.gmra.mrb[4].mxu0 %vm111_vm0, %v479_v61  ;;  %2684 = vmatprep.subr.bf16.mxu1 %v3005_v13 }
 0x319   :  { %2677 = vmatpush3.bf16.msra.mxu0 %v3180_v14  ;;  %2543 = vmatprep.mubr.msk.f32.mxu0 %vm3006_vm1, %v3007_v15 }
 0x31a   :  { %2681 = vmatprep.subr.bf16.mxu0 %v3005_v13 }
 0x3e9   :  { %v628_v62 = vpop.f32.mrb[4].mxu1 }
 0x3ea   :  { %v633_v63 = vrot.slane %v628_v62, 4  ;;  %v2538_v0 = vpop.f32.mrb[5].mxu1 }
 0x3eb   :  { %v548_v1 = vpop.f32.mrb[4].mxu0 }
 0x3ec   :  { %v635_v2 = vadd.f32 %v633_v63, %v3215_v26  ;;  %v553_v3 = vrot.slane %v548_v1, 6  ;;  %v2531_v4 = vpop.f32.mrb[5].mxu0 }
 0x3ee   :  { %2763 = vtanh.f32 %v635_v2  ;;  %v555_v5 = vadd.f32 %v553_v3, %v3213_v25  ;;  %v2390_v8 = vmul.f32 -1.442695, %v635_v2 }
 0x3f0   :  { %2765 = vtanh.f32 %v555_v5  ;;  %v2389_v9 = vmul.f32 -1.442695, %v555_v5 }
 0x3f1   :  { %2767 = vpow2.f32 %v2390_v8 }
 0x3f2   :  { %2769 = vpow2.f32 %v2389_v9 }
 0x3f8   :  { %v2764_v6 = vpop.eup %2763 }
 0x3f9   :  { %675 = vrot.lane.b32.xlu0 %v2764_v6, %s3008_s3 }
 0x3fa   :  { %v2766_v7 = vpop.eup %2765 }
 0x3fb   :  { %648 = vrot.lane.b32.xlu1 %v2766_v7, %s3008_s3  ;;  %v2768_v10 = vpop.eup %2767 }
 0x3fc   :  { %v2770_v11 = vpop.eup %2769  ;;  %v666_v16 = vadd.f32 1.0, %v2768_v10 }
 0x3fd   :  { %v639_v17 = vadd.f32 1.0, %v2770_v11 }
 0x3fe   :  { %2771 = vrcp.f32 %v666_v16 }
 0x3ff   :  { %2773 = vrcp.f32 %v639_v17 }
 0x408   :  { %v2772_v18 = vpop.eup %2771 }
 0x409   :  { %v2774_v23 = vpop.eup %2773  ;;  %v673_v29 = vmul.f32 %v2772_v18, %v671_v28 }
 0x40a   :  { %v646_v33 = vmul.f32 %v2774_v23, %v644_v30 }
 0x46b   :  { %v676_v19 = vpop.permute.xlu0 %675 }
 0x46c   :  { %v678_v21 = vmul.f32 %v2772_v18, %v676_v19 }
 0x46d   :  { %v649_v24 = vpop.permute.xlu1 %648 }
 0x46e   :  { %680 = vrot.lane.b32.xlu0 %v678_v21, %s3009_s6  ;;  %v651_v27 = vmul.f32 %v2774_v23, %v649_v24 }
 0x470   :  { %653 = vrot.lane.b32.xlu1 %v651_v27, %s3009_s6 }
 0x4e0   :  { %v681_v31 = vpop.permute.xlu0 %680 }
 0x4e1   :  { %v683_v32 = vadd.f32 %v681_v31, %v673_v29 }
 0x4e2   :  { %v654_v34 = vpop.permute.xlu1 %653 }
 0x4e3   :  { %2775 = vtanh.f32 %v683_v32  ;;  %v656_v35 = vadd.f32 %v654_v34, %v646_v33  ;;  %v885_v6 = vrot.slane %v683_v32, 2 }
 0x4e5   :  { %2777 = vtanh.f32 %v656_v35  ;;  %v858_v8 = vrot.slane %v656_v35, 6 }
 0x4ed   :  { %v2776_v36 = vpop.eup %2775 }
 0x4ee   :  { %686 = vrot.lane.b32.xlu0 %v2776_v36, %s3010_s17 }
 0x4ef   :  { %v2778_v37 = vpop.eup %2777 }
 0x4f0   :  { %659 = vrot.lane.b32.xlu1 %v2778_v37, %s3010_s17 }
 0x560   :  { %v687_v38 = vpop.permute.xlu0 %686 }
 0x561   :  { %v3259_v39 = vmul.f32 %v2772_v18, %v687_v38 }
 0x562   :  { %v660_v41 = vpop.permute.xlu1 %659 }
 0x563   :  { %v771_v40 = vrot.slane %v3259_v39, 4  ;;  %v3262_v42 = vmul.f32 %v2774_v23, %v660_v41 }
 0x565   :  { %772 = vrot.lane.b32.xlu0 %v771_v40, %s3011_s19  ;;  %v691_v43 = vrot.slane %v3262_v42, 2  ;;  %v1964_v29 = vsel %vm1963_vm2, %v3234_v59, %v3262_v42 }
 0x567   :  { %692 = vrot.lane.b32.xlu1 %v691_v43, %s3011_s19 }
 0x5d7   :  { %v773_v44 = vpop.permute.xlu0 %772 }
 0x5d8   :  { %2551 = vmatmul.mubr.msk.f32.vlgmr.msra.gmra.mrb[6].mxu1 %vm111_vm0, %v773_v44 }
 0x5d9   :  { %2686 = vmatpush3.bf16.msra.mxu1 %v3177_v12  ;;  %2564 = vmatprep.mubr.msk.f32.mxu1 %vm3006_vm1, %v3007_v15  ;;  %v693_v45 = vpop.permute.xlu1 %692 }
 0x5da   :  { %2690 = vmatprep.subr.bf16.mxu1 %v3005_v13  ;;  %2544 = vmatmul.mubr.msk.f32.vlgmr.msra.gmra.mrb[6].mxu0 %vm111_vm0, %v693_v45 }
 0x5db   :  { %2683 = vmatpush3.bf16.msra.mxu0 %v3180_v14  ;;  %2557 = vmatprep.mubr.msk.f32.mxu0 %vm3006_vm1, %v3007_v15 }
 0x5dc   :  { %2687 = vmatprep.subr.bf16.mxu0 %v3005_v13 }
 0x6ab   :  { %v842_v46 = vpop.f32.mrb[6].mxu1 }
 0x6ac   :  { %v847_v47 = vrot.slane %v842_v46, 6  ;;  %v2552_v48 = vpop.f32.mrb[7].mxu1 }
 0x6ad   :  { %v762_v50 = vpop.f32.mrb[6].mxu0 }
 0x6ae   :  { %v849_v49 = vadd.f32 %v847_v47, %v3215_v26  ;;  %v767_v51 = vrot.slane %v762_v50, 4  ;;  %v2545_v52 = vpop.f32.mrb[7].mxu0 }
 0x6b0   :  { %2779 = vtanh.f32 %v849_v49  ;;  %v769_v53 = vadd.f32 %v767_v51, %v3213_v25  ;;  %v2394_v57 = vmul.f32 -1.442695, %v849_v49 }
 0x6b2   :  { %2781 = vtanh.f32 %v769_v53  ;;  %v2393_v58 = vmul.f32 -1.442695, %v769_v53 }
 0x6b3   :  { %2783 = vpow2.f32 %v2394_v57 }
 0x6b4   :  { %2785 = vpow2.f32 %v2393_v58 }
 0x6ba   :  { %v2780_v54 = vpop.eup %2779 }
 0x6bb   :  { %889 = vrot.lane.b32.xlu0 %v2780_v54, %s3008_s3 }
 0x6bc   :  { %v2782_v55 = vpop.eup %2781 }
 0x6bd   :  { %862 = vrot.lane.b32.xlu1 %v2782_v55, %s3008_s3  ;;  %v2784_v60 = vpop.eup %2783 }
 0x6be   :  { %v2786_v61 = vpop.eup %2785  ;;  %v880_v62 = vadd.f32 1.0, %v2784_v60 }
 0x6bf   :  { %v853_v63 = vadd.f32 1.0, %v2786_v61 }
 0x6c0   :  { %2787 = vrcp.f32 %v880_v62 }
 0x6c1   :  { %2789 = vrcp.f32 %v853_v63 }
 0x6ca   :  { %v2788_v0 = vpop.eup %2787 }
 0x6cb   :  { %v2790_v3 = vpop.eup %2789  ;;  %v887_v7 = vmul.f32 %v2788_v0, %v885_v6 }
 0x6cc   :  { %v860_v11 = vmul.f32 %v2790_v3, %v858_v8 }
 0x72d   :  { %v890_v1 = vpop.permute.xlu0 %889 }
 0x72e   :  { %v892_v2 = vmul.f32 %v2788_v0, %v890_v1 }
 0x72f   :  { %v863_v4 = vpop.permute.xlu1 %862 }
 0x730   :  { %894 = vrot.lane.b32.xlu0 %v892_v2, %s3009_s6  ;;  %v865_v5 = vmul.f32 %v2790_v3, %v863_v4 }
 0x732   :  { %867 = vrot.lane.b32.xlu1 %v865_v5, %s3009_s6 }
 0x7a2   :  { %v895_v9 = vpop.permute.xlu0 %894 }
 0x7a3   :  { %v3283_v10 = vadd.f32 %v895_v9, %v887_v7 }
 0x7a4   :  { %v868_v16 = vpop.permute.xlu1 %867 }
 0x7a5   :  { %2791 = vtanh.f32 %v3283_v10  ;;  %v3286_v17 = vadd.f32 %v868_v16, %v860_v11  ;;  %v1096_v53 = vrot.slane %v3283_v10, 2 }
 0x7a7   :  { %2793 = vtanh.f32 %v3286_v17  ;;  %v1069_v58 = vrot.slane %v3286_v17, 6 }
 0x7af   :  { %v2792_v18 = vpop.eup %2791 }
 0x7b0   :  { %900 = vrot.lane.b32.xlu0 %v2792_v18, %s3010_s17 }
 0x7b1   :  { %v2794_v19 = vpop.eup %2793 }
 0x7b2   :  { %873 = vrot.lane.b32.xlu1 %v2794_v19, %s3010_s17 }
 0x822   :  { %v901_v21 = vpop.permute.xlu0 %900 }
 0x823   :  { %v3291_v23 = vmul.f32 %v2788_v0, %v901_v21 }
 0x824   :  { %v874_v27 = vpop.permute.xlu1 %873 }
 0x825   :  { %v985_v24 = vrot.slane %v3291_v23, 2  ;;  %v876_v28 = vmul.f32 %v2790_v3, %v874_v27 }
 0x827   :  { %986 = vrot.lane.b32.xlu0 %v985_v24, %s3011_s19  ;;  %v905_v30 = vrot.slane %v876_v28, 4  ;;  %v3299_v31 = vsel %vm1965_vm3, %v1964_v29, %v876_v28 }
 0x829   :  { %906 = vrot.lane.b32.xlu1 %v905_v30, %s3011_s19 }
 0x899   :  { %v987_v32 = vpop.permute.xlu0 %986 }
 0x89a   :  { %2565 = vmatmul.mubr.msk.f32.vlgmr.msra.gmra.mrb[8].mxu1 %vm111_vm0, %v987_v32 }
 0x89b   :  { %2692 = vmatpush3.bf16.msra.mxu1 %v3177_v12  ;;  %2578 = vmatprep.mubr.msk.f32.mxu1 %vm3006_vm1, %v3007_v15  ;;  %v907_v33 = vpop.permute.xlu1 %906 }
 0x89c   :  { %2696 = vmatprep.subr.bf16.mxu1 %v3005_v13  ;;  %2558 = vmatmul.mubr.msk.f32.vlgmr.msra.gmra.mrb[8].mxu0 %vm111_vm0, %v907_v33 }
 0x89d   :  { %2689 = vmatpush3.bf16.msra.mxu0 %v3180_v14  ;;  %2571 = vmatprep.mubr.msk.f32.mxu0 %vm3006_vm1, %v3007_v15 }
 0x89e   :  { %2693 = vmatprep.subr.bf16.mxu0 %v3005_v13 }
 0x96d   :  { %v1056_v59 = vpop.f32.mrb[8].mxu1 }
 0x96e   :  { %v1060_v34 = vadd.f32 %v1056_v59, %v3215_v26  ;;  %v2566_v35 = vpop.f32.mrb[9].mxu1 }
 0x96f   :  { %v976_v36 = vpop.f32.mrb[8].mxu0 }
 0x970   :  { %2795 = vtanh.f32 %v1060_v34  ;;  %v981_v37 = vrot.slane %v976_v36, 2  ;;  %v2559_v38 = vpop.f32.mrb[9].mxu0  ;;  %v2398_v43 = vmul.f32 -1.442695, %v1060_v34 }
 0x972   :  { %v983_v40 = vadd.f32 %v981_v37, %v3213_v25 }
 0x974   :  { %2797 = vtanh.f32 %v983_v40  ;;  %v2397_v44 = vmul.f32 -1.442695, %v983_v40 }
 0x975   :  { %2799 = vpow2.f32 %v2398_v43 }
 0x976   :  { %2801 = vpow2.f32 %v2397_v44 }
 0x97a   :  { %v2796_v41 = vpop.eup %2795 }
 0x97b   :  { %1100 = vrot.lane.b32.xlu0 %v2796_v41, %s3008_s3 }
 0x97e   :  { %v2798_v42 = vpop.eup %2797 }
 0x97f   :  { %1073 = vrot.lane.b32.xlu1 %v2798_v42, %s3008_s3  ;;  %v2800_v45 = vpop.eup %2799 }
 0x980   :  { %v1091_v26 = vadd.f32 1.0, %v2800_v45  ;;  %v2802_v46 = vpop.eup %2801 }
 0x981   :  { %v1064_v47 = vadd.f32 1.0, %v2802_v46 }
 0x982   :  { %2803 = vrcp.f32 %v1091_v26 }
 0x983   :  { %2805 = vrcp.f32 %v1064_v47 }
 0x98c   :  { %v2804_v48 = vpop.eup %2803 }
 0x98d   :  { %v2806_v50 = vpop.eup %2805  ;;  %v1098_v54 = vmul.f32 %v2804_v48, %v1096_v53 }
 0x98e   :  { %v1071_v60 = vmul.f32 %v2806_v50, %v1069_v58 }
 0x9ed   :  { %v1101_v49 = vpop.permute.xlu0 %1100 }
 0x9ee   :  { %v1103_v25 = vmul.f32 %v2804_v48, %v1101_v49 }
 0x9f0   :  { %1105 = vrot.lane.b32.xlu0 %v1103_v25, %s3009_s6 }
 0x9f1   :  { %v1074_v51 = vpop.permute.xlu1 %1073 }
 0x9f2   :  { %v1076_v52 = vmul.f32 %v2806_v50, %v1074_v51 }
 0x9f4   :  { %1078 = vrot.lane.b32.xlu1 %v1076_v52, %s3009_s6 }
 0xa62   :  { %v1106_v55 = vpop.permute.xlu0 %1105 }
 0xa63   :  { %v3319_v57 = vadd.f32 %v1106_v55, %v1098_v54 }
 0xa65   :  { %2807 = vtanh.f32 %v3319_v57  ;;  %v1306_v38 = vrot.slane %v3319_v57, 2 }
 0xa66   :  { %v1079_v61 = vpop.permute.xlu1 %1078 }
 0xa67   :  { %v3323_v62 = vadd.f32 %v1079_v61, %v1071_v60 }
 0xa69   :  { %2809 = vtanh.f32 %v3323_v62  ;;  %v1279_v43 = vrot.slane %v3323_v62, 6 }
 0xa6f   :  { %v2808_v63 = vpop.eup %2807 }
 0xa70   :  { %1111 = vrot.lane.b32.xlu0 %v2808_v63, %s3010_s17 }
 0xa73   :  { %v2810_v0 = vpop.eup %2809 }
 0xa74   :  { %1084 = vrot.lane.b32.xlu1 %v2810_v0, %s3010_s17 }
 0xae2   :  { %v1112_v1 = vpop.permute.xlu0 %1111 }
 0xae3   :  { %v3328_v2 = vmul.f32 %v2804_v48, %v1112_v1 }
 0xae5   :  { %1193 = vrot.lane.b32.xlu0 %v3328_v2, %s3011_s19 }
 0xae6   :  { %v1085_v3 = vpop.permute.xlu1 %1084 }
 0xae7   :  { %v1087_v4 = vmul.f32 %v2806_v50, %v1085_v3 }
 0xae9   :  { %v1116_v5 = vrot.slane %v1087_v4, 6  ;;  %v3334_v6 = vsel %vm1967_vm4, %v3299_v31, %v1087_v4 }
 0xaeb   :  { %1117 = vrot.lane.b32.xlu1 %v1116_v5, %s3011_s19 }
 0xb57   :  { %v1194_v7 = vpop.permute.xlu0 %1193 }
 0xb58   :  { %2579 = vmatmul.mubr.msk.f32.vlgmr.msra.gmra.mrb[10].mxu1 %vm111_vm0, %v1194_v7 }
 0xb59   :  { %2698 = vmatpush3.bf16.msra.mxu1 %v3177_v12  ;;  %2592 = vmatprep.mubr.msk.f32.mxu1 %vm3006_vm1, %v3007_v15 }
 0xb5a   :  { %2702 = vmatprep.subr.bf16.mxu1 %v3005_v13 }
 0xb5d   :  { %v1118_v8 = vpop.permute.xlu1 %1117 }
 0xb5e   :  { %2572 = vmatmul.mubr.msk.f32.vlgmr.msra.gmra.mrb[10].mxu0 %vm111_vm0, %v1118_v8 }
 0xb5f   :  { %2695 = vmatpush3.bf16.msra.mxu0 %v3180_v14  ;;  %2585 = vmatprep.mubr.msk.f32.mxu0 %vm3006_vm1, %v3007_v15 }
 0xb60   :  { %2699 = vmatprep.subr.bf16.mxu0 %v3005_v13 }
 0xc2b   :  { %v1263_v9 = vpop.f32.mrb[10].mxu1 }
 0xc2c   :  { %v1268_v10 = vrot.slane %v1263_v9, 2  ;;  %v2580_v11 = vpop.f32.mrb[11].mxu1 }
 0xc2e   :  { %v1270_v16 = vadd.f32 %v1268_v10, %v3209_v20 }
 0xc30   :  { %2811 = vtanh.f32 %v1270_v16  ;;  %v2402_v27 = vmul.f32 -1.442695, %v1270_v16 }
 0xc31   :  { %v1187_v17 = vpop.f32.mrb[10].mxu0 }
 0xc32   :  { %v1191_v18 = vadd.f32 %v1187_v17, %v3211_v22  ;;  %v2573_v19 = vpop.f32.mrb[11].mxu0 }
 0xc34   :  { %2813 = vtanh.f32 %v1191_v18  ;;  %v2401_v28 = vmul.f32 -1.442695, %v1191_v18 }
 0xc35   :  { %2815 = vpow2.f32 %v2402_v27 }
 0xc36   :  { %2817 = vpow2.f32 %v2401_v28 }
 0xc3a   :  { %v2812_v21 = vpop.eup %2811 }
 0xc3b   :  { %1310 = vrot.lane.b32.xlu0 %v2812_v21, %s3008_s3 }
 0xc3e   :  { %v2814_v24 = vpop.eup %2813 }
 0xc3f   :  { %1283 = vrot.lane.b32.xlu1 %v2814_v24, %s3008_s3  ;;  %v2816_v29 = vpop.eup %2815 }
 0xc40   :  { %v1301_v30 = vadd.f32 1.0, %v2816_v29  ;;  %v2818_v31 = vpop.eup %2817 }
 0xc41   :  { %v1274_v32 = vadd.f32 1.0, %v2818_v31 }
 0xc42   :  { %2819 = vrcp.f32 %v1301_v30 }
 0xc43   :  { %2821 = vrcp.f32 %v1274_v32 }
 0xc4c   :  { %v2820_v33 = vpop.eup %2819 }
 0xc4d   :  { %v2822_v35 = vpop.eup %2821  ;;  %v1308_v40 = vmul.f32 %v2820_v33, %v1306_v38 }
 0xc4e   :  { %v1281_v44 = vmul.f32 %v2822_v35, %v1279_v43 }
 0xcad   :  { %v1311_v59 = vpop.permute.xlu0 %1310 }
 0xcae   :  { %v1313_v34 = vmul.f32 %v2820_v33, %v1311_v59 }
 0xcb0   :  { %1315 = vrot.lane.b32.xlu0 %v1313_v34, %s3009_s6 }
 0xcb1   :  { %v1284_v36 = vpop.permute.xlu1 %1283 }
 0xcb2   :  { %v1286_v37 = vmul.f32 %v2822_v35, %v1284_v36 }
 0xcb4   :  { %1288 = vrot.lane.b32.xlu1 %v1286_v37, %s3009_s6 }
 0xd22   :  { %v1316_v41 = vpop.permute.xlu0 %1315 }
 0xd23   :  { %v1318_v42 = vadd.f32 %v1316_v41, %v1308_v40 }
 0xd25   :  { %2823 = vtanh.f32 %v1318_v42  ;;  %v1519_v21 = vrot.slane %v1318_v42, 2 }
 0xd26   :  { %v1289_v45 = vpop.permute.xlu1 %1288 }
 0xd27   :  { %v1291_v26 = vadd.f32 %v1289_v45, %v1281_v44 }
 0xd29   :  { %2825 = vtanh.f32 %v1291_v26  ;;  %v1492_v27 = vrot.slane %v1291_v26, 6 }
 0xd2f   :  { %v2824_v46 = vpop.eup %2823 }
 0xd30   :  { %1321 = vrot.lane.b32.xlu0 %v2824_v46, %s3010_s17 }
 0xd33   :  { %v2826_v47 = vpop.eup %2825 }
 0xd34   :  { %1294 = vrot.lane.b32.xlu1 %v2826_v47, %s3010_s17 }
 0xda2   :  { %v1322_v48 = vpop.permute.xlu0 %1321 }
 0xda3   :  { %v3357_v49 = vmul.f32 %v2820_v33, %v1322_v48 }
 0xda5   :  { %v1405_v25 = vrot.slane %v3357_v49, 6 }
 0xda6   :  { %v1295_v50 = vpop.permute.xlu1 %1294 }
 0xda7   :  { %1406 = vrot.lane.b32.xlu0 %v1405_v25, %s3011_s19  ;;  %v3361_v51 = vmul.f32 %v2822_v35, %v1295_v50 }
 0xda9   :  { %1326 = vrot.lane.b32.xlu1 %v3361_v51, %s3011_s19 }
 0xe19   :  { %v1407_v52 = vpop.permute.xlu0 %1406 }
 0xe1a   :  { %2593 = vmatmul.mubr.msk.f32.vlgmr.msra.gmra.mrb[12].mxu1 %vm111_vm0, %v1407_v52 }
 0xe1b   :  { %2704 = vmatpush3.bf16.msra.mxu1 %v3177_v12  ;;  %2606 = vmatprep.mubr.msk.f32.mxu1 %vm3006_vm1, %v3007_v15  ;;  %v1327_v53 = vpop.permute.xlu1 %1326 }
 0xe1c   :  { %2708 = vmatprep.subr.bf16.mxu1 %v3005_v13  ;;  %2586 = vmatmul.mubr.msk.f32.vlgmr.msra.gmra.mrb[12].mxu0 %vm111_vm0, %v1327_v53 }
 0xe1d   :  { %2701 = vmatpush3.bf16.msra.mxu0 %v3180_v14  ;;  %2599 = vmatprep.mubr.msk.f32.mxu0 %vm3006_vm1, %v3007_v15 }
 0xe1e   :  { %2705 = vmatprep.subr.bf16.mxu0 %v3005_v13 }
 0xeed   :  { %v1476_v54 = vpop.f32.mrb[12].mxu1 }
 0xeee   :  { %v1481_v55 = vrot.slane %v1476_v54, 4  ;;  %v2594_v57 = vpop.f32.mrb[13].mxu1 }
 0xeef   :  { %v1396_v60 = vpop.f32.mrb[12].mxu0 }
 0xef0   :  { %v1483_v58 = vadd.f32 %v1481_v55, %v3209_v20  ;;  %v1401_v61 = vrot.slane %v1396_v60, 6  ;;  %v2587_v62 = vpop.f32.mrb[13].mxu0 }
 0xef2   :  { %2827 = vtanh.f32 %v1483_v58  ;;  %v1403_v63 = vadd.f32 %v1401_v61, %v3211_v22  ;;  %v2406_v3 = vmul.f32 -1.442695, %v1483_v58 }
 0xef4   :  { %2829 = vtanh.f32 %v1403_v63  ;;  %v2405_v4 = vmul.f32 -1.442695, %v1403_v63 }
 0xef5   :  { %2831 = vpow2.f32 %v2406_v3 }
 0xef6   :  { %2833 = vpow2.f32 %v2405_v4 }
 0xefc   :  { %v2828_v0 = vpop.eup %2827 }
 0xefd   :  { %1523 = vrot.lane.b32.xlu0 %v2828_v0, %s3008_s3 }
 0xefe   :  { %v2830_v1 = vpop.eup %2829 }
 0xeff   :  { %1496 = vrot.lane.b32.xlu1 %v2830_v1, %s3008_s3  ;;  %v2832_v5 = vpop.eup %2831 }
 0xf00   :  { %v2834_v7 = vpop.eup %2833  ;;  %v1514_v8 = vadd.f32 1.0, %v2832_v5 }
 0xf01   :  { %v1487_v9 = vadd.f32 1.0, %v2834_v7 }
 0xf02   :  { %2835 = vrcp.f32 %v1514_v8 }
 0xf03   :  { %2837 = vrcp.f32 %v1487_v9 }
 0xf0c   :  { %v2836_v10 = vpop.eup %2835 }
 0xf0d   :  { %v2838_v17 = vpop.eup %2837  ;;  %v1521_v24 = vmul.f32 %v2836_v10, %v1519_v21 }
 0xf0e   :  { %v1494_v30 = vmul.f32 %v2838_v17, %v1492_v27 }
 0xf6f   :  { %v1524_v11 = vpop.permute.xlu0 %1523 }
 0xf70   :  { %v1526_v16 = vmul.f32 %v2836_v10, %v1524_v11 }
 0xf71   :  { %v1497_v18 = vpop.permute.xlu1 %1496 }
 0xf72   :  { %1528 = vrot.lane.b32.xlu0 %v1526_v16, %s3009_s6  ;;  %v1499_v19 = vmul.f32 %v2838_v17, %v1497_v18 }
 0xf74   :  { %1501 = vrot.lane.b32.xlu1 %v1499_v19, %s3009_s6 }
 0xfe4   :  { %v1529_v28 = vpop.permute.xlu0 %1528 }
 0xfe5   :  { %v1531_v29 = vadd.f32 %v1529_v28, %v1521_v24 }
 0xfe6   :  { %v1502_v31 = vpop.permute.xlu1 %1501 }
 0xfe7   :  { %2839 = vtanh.f32 %v1531_v29  ;;  %v1504_v32 = vadd.f32 %v1502_v31, %v1494_v30  ;;  %v1733_v1 = vrot.slane %v1531_v29, 2 }
 0xfe9   :  { %2841 = vtanh.f32 %v1504_v32  ;;  %v1706_v4 = vrot.slane %v1504_v32, 6 }
 0xff1   :  { %v2840_v33 = vpop.eup %2839 }
 0xff2   :  { %1534 = vrot.lane.b32.xlu0 %v2840_v33, %s3010_s17 }
 0xff3   :  { %v2842_v59 = vpop.eup %2841 }
 0xff4   :  { %1507 = vrot.lane.b32.xlu1 %v2842_v59, %s3010_s17 }
0x1064   :  { %v1535_v34 = vpop.permute.xlu0 %1534 }
0x1065   :  { %v3383_v35 = vmul.f32 %v2836_v10, %v1535_v34 }
0x1066   :  { %v1508_v37 = vpop.permute.xlu1 %1507 }
0x1067   :  { %v1619_v36 = vrot.slane %v3383_v35, 4  ;;  %v3386_v38 = vmul.f32 %v2838_v17, %v1508_v37 }
0x1069   :  { %1620 = vrot.lane.b32.xlu0 %v1619_v36, %s3011_s19  ;;  %v1539_v40 = vrot.slane %v3386_v38, 2  ;;  %v1969_v27 = vsel %vm1963_vm2, %v3361_v51, %v3386_v38 }
0x106b   :  { %1540 = vrot.lane.b32.xlu1 %v1539_v40, %s3011_s19 }
0x10db   :  { %v1621_v41 = vpop.permute.xlu0 %1620 }
0x10dc   :  { %2607 = vmatmul.mubr.msk.f32.vlgmr.msra.gmra.mrb[14].mxu1 %vm111_vm0, %v1621_v41 }
0x10dd   :  { %2710 = vmatpush3.bf16.msra.mxu1 %v3177_v12  ;;  %2620 = vmatprep.mubr.msk.f32.mxu1 %vm3006_vm1, %v3007_v15  ;;  %v1541_v42 = vpop.permute.xlu1 %1540 }
0x10de   :  { %2723 = vmatprep.subr.bf16.mxu1 %v3005_v13  ;;  %2600 = vmatmul.mubr.msk.f32.vlgmr.msra.gmra.mrb[14].mxu0 %vm111_vm0, %v1541_v42 }
0x10df   :  { %2707 = vmatpush3.bf16.msra.mxu0 %v3180_v14  ;;  %2613 = vmatprep.mubr.msk.f32.mxu0 %vm3006_vm1, %v3007_v15 }
0x11af   :  { %v1690_v43 = vpop.f32.mrb[14].mxu1 }
0x11b0   :  { %v1695_v44 = vrot.slane %v1690_v43, 6  ;;  %v2608_v45 = vpop.f32.mrb[15].mxu1 }
0x11b1   :  { %v1610_v46 = vpop.f32.mrb[14].mxu0 }
0x11b2   :  { %v1697_v26 = vadd.f32 %v1695_v44, %v3209_v20  ;;  %v1615_v12 = vrot.slane %v1610_v46, 4  ;;  %v2601_v47 = vpop.f32.mrb[15].mxu0 }
0x11b4   :  { %2843 = vtanh.f32 %v1697_v26  ;;  %v1617_v48 = vadd.f32 %v1615_v12, %v3211_v22  ;;  %v2410_v14 = vmul.f32 -1.442695, %v1697_v26 }
0x11b6   :  { %2845 = vtanh.f32 %v1617_v48  ;;  %v2409_v52 = vmul.f32 -1.442695, %v1617_v48 }
0x11b7   :  { %2847 = vpow2.f32 %v2410_v14 }
0x11b8   :  { %2849 = vpow2.f32 %v2409_v52 }
0x11be   :  { %v2844_v25 = vpop.eup %2843 }
0x11bf   :  { %1737 = vrot.lane.b32.xlu0 %v2844_v25, %s3008_s3 }
0x11c0   :  { %v2846_v50 = vpop.eup %2845 }
0x11c1   :  { %1710 = vrot.lane.b32.xlu1 %v2846_v50, %s3008_s3  ;;  %v2848_v53 = vpop.eup %2847 }
0x11c2   :  { %v2850_v54 = vpop.eup %2849  ;;  %v1728_v55 = vadd.f32 1.0, %v2848_v53 }
0x11c3   :  { %v1701_v57 = vadd.f32 1.0, %v2850_v54 }
0x11c4   :  { %2851 = vrcp.f32 %v1728_v55 }
0x11c5   :  { %2853 = vrcp.f32 %v1701_v57  ;;  %v1980_v57 = vld [vmem:[%s3511_s8] sm:$0xff] }
0x11ce   :  { %v2852_v58 = vpop.eup %2851 }
0x11cf   :  { %v2854_v62 = vpop.eup %2853  ;;  %v1735_v3 = vmul.f32 %v2852_v58, %v1733_v1 }
0x11d0   :  { %v1708_v8 = vmul.f32 %v2854_v62, %v1706_v4  ;;  %v1979_v4 = vld [vmem:[#allocation7 + $0x8] sm:$0xff] }
0x1231   :  { %v1738_v60 = vpop.permute.xlu0 %1737 }
0x1232   :  { %v1740_v61 = vmul.f32 %v2852_v58, %v1738_v60 }
0x1233   :  { %v1711_v63 = vpop.permute.xlu1 %1710 }
0x1234   :  { %1742 = vrot.lane.b32.xlu0 %v1740_v61, %s3009_s6  ;;  %v1713_v0 = vmul.f32 %v2854_v62, %v1711_v63 }
0x1236   :  { %1715 = vrot.lane.b32.xlu1 %v1713_v0, %s3009_s6 }
0x12a6   :  { %v1743_v5 = vpop.permute.xlu0 %1742 }
0x12a7   :  { %v1745_v7 = vadd.f32 %v1743_v5, %v1735_v3  ;;  %v1978_v3 = vld [vmem:[#allocation7] sm:$0xff] }
0x12a8   :  { %v1716_v9 = vpop.permute.xlu1 %1715  ;;  %v2715_v5 = vpack.c.bf16 %v1979_v4, %v1978_v3 }
0x12a9   :  { %2855 = vtanh.f32 %v1745_v7  ;;  %v1718_v10 = vadd.f32 %v1716_v9, %v1708_v8  ;;  %v1944_v48 = vrot.slane %v1745_v7, 2 }
0x12ab   :  { %2857 = vtanh.f32 %v1718_v10  ;;  %v1917_v52 = vrot.slane %v1718_v10, 6 }
0x12b3   :  { %v2856_v11 = vpop.eup %2855 }
0x12b4   :  { %1748 = vrot.lane.b32.xlu0 %v2856_v11, %s3010_s17  ;;  %v2152_v11 = vld [vmem:[#allocation8] sm:$0xff] }
0x12b5   :  { %v2858_v16 = vpop.eup %2857 }
0x12b6   :  { %1721 = vrot.lane.b32.xlu1 %v2858_v16, %s3010_s17  ;;  %v2153_v16 = vld [vmem:[#allocation8 + $0x8] sm:$0xff] }
0x1326   :  { %v1749_v17 = vpop.permute.xlu0 %1748 }
0x1327   :  { %v3408_v18 = vmul.f32 %v2852_v58, %v1749_v17  ;;  %v1981_v58 = vld [vmem:[%s3511_s8 + $0x8] sm:$0xff] }
0x1328   :  { %v1722_v21 = vpop.permute.xlu1 %1721  ;;  %v2711_v60 = vpack.c.bf16 %v1981_v58, %v1980_v57 }
0x1329   :  { %v1833_v19 = vrot.slane %v3408_v18, 2  ;;  %v1724_v24 = vmul.f32 %v2854_v62, %v1722_v21  ;;  %v1975_v62 = vsel %vm1963_vm2, %v3328_v2, %v3291_v23  ;;  %v2880_v21 = vld [vmem:[%s3503_s0 + $0x8] sm:$0xff] }
0x132a   :  { %2712 = vmatprep.subr.bf16.mxu0 %v2711_v60  ;;  %v1976_v0 = vsel %vm1965_vm3, %v1975_v62, %v3259_v39 }
0x132b   :  { %1834 = vrot.lane.b32.xlu0 %v1833_v19, %s3011_s19  ;;  %v1753_v28 = vrot.slane %v1724_v24, 4  ;;  %v3416_v29 = vsel %vm1965_vm3, %v1969_v27, %v1724_v24  ;;  %v1977_v1 = vsel %vm1967_vm4, %v1976_v0, %v3231_v56  ;;  %v2263_v24 = vld [vmem:[%s3514_s11] sm:$0xff]  ;;  %v2264_v27 = vld [vmem:[%s3514_s11 + $0x8] sm:$0xff] }
0x132d   :  { %1754 = vrot.lane.b32.xlu1 %v1753_v28, %s3011_s19  ;;  %v2724_v28 = vpack.c.bf16 %v2264_v27, %v2263_v24 }
0x139d   :  { %v1835_v30 = vpop.permute.xlu0 %1834 }
0x139e   :  { %2621 = vmatmul.mubr.msk.f32.vlgmr.msra.gmra.mrb[16].mxu1 %vm111_vm0, %v1835_v30  ;;  %v2266_v30 = vld [vmem:[%s3514_s11 + $0x18] sm:$0xff] }
0x139f   :  { %2652 = vmatprep.mubr.msk.f32.mxu1 %vm3006_vm1, %v3007_v15  ;;  %v1755_v31 = vpop.permute.xlu1 %1754  ;;  %2725 = vmatpush3.bf16.msra.mxu1 %v2724_v28 }
0x13a0   :  { %2614 = vmatmul.mubr.msk.f32.vlgmr.msra.gmra.mrb[16].mxu0 %vm111_vm0, %v1755_v31  ;;  %2726 = vmatprep.subr.bf16.mxu1 %v3005_v13 }
0x13a1   :  { %2714 = vmatpush3.bf16.msra.mxu0 %v2711_v60 }
0x13a2   :  { %2716 = vmatprep.subr.bf16.mxu0 %v2715_v5 }
0x1471   :  { %v1904_v32 = vpop.f32.mrb[16].mxu1 }
0x1472   :  { %v1908_v51 = vadd.f32 %v1904_v32, %v3209_v20  ;;  %v2622_v33 = vpop.f32.mrb[17].mxu1  ;;  %v2421_v32 = vld [vmem:[%s3513_s10] ss:$0 sm:$0xff] }
0x1473   :  { %v1824_v59 = vpop.f32.mrb[16].mxu0 }
0x1474   :  { %2859 = vtanh.f32 %v1908_v51  ;;  %v1829_v34 = vrot.slane %v1824_v59, 2  ;;  %v2615_v36 = vpop.f32.mrb[17].mxu0  ;;  %v2414_v15 = vmul.f32 -1.442695, %v1908_v51 }
0x1476   :  { %v1831_v37 = vadd.f32 %v1829_v34, %v3211_v22 }
0x1478   :  { %2861 = vtanh.f32 %v1831_v37  ;;  %v2413_v41 = vmul.f32 -1.442695, %v1831_v37 }
0x1479   :  { %2863 = vpow2.f32 %v2414_v15 }
0x147a   :  { %2865 = vpow2.f32 %v2413_v41 }
0x147e   :  { %v2860_v38 = vpop.eup %2859 }
0x147f   :  { %1948 = vrot.lane.b32.xlu0 %v2860_v38, %s3008_s3 }
0x1482   :  { %v2862_v40 = vpop.eup %2861 }
0x1483   :  { %1921 = vrot.lane.b32.xlu1 %v2862_v40, %s3008_s3  ;;  %v2864_v42 = vpop.eup %2863 }
0x1484   :  { %v1939_v20 = vadd.f32 1.0, %v2864_v42  ;;  %v2866_v43 = vpop.eup %2865 }
0x1485   :  { %v1912_v44 = vadd.f32 1.0, %v2866_v43 }
0x1486   :  { %2867 = vrcp.f32 %v1939_v20 }
0x1487   :  { %2869 = vrcp.f32 %v1912_v44 }
0x1490   :  { %v2868_v45 = vpop.eup %2867 }
0x1491   :  { %v2870_v46 = vpop.eup %2869  ;;  %v1946_v25 = vmul.f32 %v2868_v45, %v1944_v48 }
0x1492   :  { %v1919_v53 = vmul.f32 %v2870_v46, %v1917_v52 }
0x14f1   :  { %v1949_v26 = vpop.permute.xlu0 %1948 }
0x14f2   :  { %v1951_v22 = vmul.f32 %v2868_v45, %v1949_v26 }
0x14f4   :  { %1953 = vrot.lane.b32.xlu0 %v1951_v22, %s3009_s6 }
0x14f5   :  { %v1922_v12 = vpop.permute.xlu1 %1921 }
0x14f6   :  { %v1924_v47 = vmul.f32 %v2870_v46, %v1922_v12  ;;  %v2422_v12 = vld [vmem:[%s3515_s12] ss:$0 sm:$0xff]  ;;  %s2368_s12 = sshll.u32 %s3012_s15, 4  ;;  %s2369_s12 = int_to_ptr.vmem [resolvable:$true] %s2368_s12 }
0x14f7   :  { %s2969_s1 = scalar_lea.vmem %s2369_s12, 32  ;;  %p2974_p5 = scmp.lt.s32.totalorder %s2369_s12, %s2369_s12 }
0x14f8   :  { %1926 = vrot.lane.b32.xlu1 %v1924_v47, %s3009_s6  ;;  %p2970_p4 = scmp.ne.s32.totalorder %s2369_s12, %s2969_s1  ;;  %p2975_p6 = scmp.lt.s32.totalorder %s2969_s1, %s2969_s1 }
0x14fa   :  { %p2976_p7 = por %p2975_p6, %p2974_p5 }
0x14fc   :  { %p2977_p8 = pnand %p2976_p7, %p2970_p4 }
0x1566   :  { %v1954_v50 = vpop.permute.xlu0 %1953 }
0x1567   :  { %v1956_v14 = vadd.f32 %v1954_v50, %v1946_v25 }
0x1569   :  { %2871 = vtanh.f32 %v1956_v14 }
0x156a   :  { %v1927_v54 = vpop.permute.xlu1 %1926 }
0x156b   :  { %v1929_v55 = vadd.f32 %v1927_v54, %v1919_v53 }
0x156d   :  { %2873 = vtanh.f32 %v1929_v55 }
0x1573   :  { %v2872_v61 = vpop.eup %2871 }
0x1574   :  { %1959 = vrot.lane.b32.xlu0 %v2872_v61, %s3010_s17 }
0x1577   :  { %v2874_v63 = vpop.eup %2873 }
0x1578   :  { %1932 = vrot.lane.b32.xlu1 %v2874_v63, %s3010_s17 }
0x157c   :  { %1986 = vrot.lane.b32.xlu1 %v1977_v1, %s3011_s19 }
0x15e6   :  { %v1960_v7 = vpop.permute.xlu0 %1959 }
0x15e7   :  { %v1962_v8 = vmul.f32 %v2868_v45, %v1960_v7 }
0x15e9   :  { %v1972_v23 = vsel %vm1963_vm2, %v1962_v8, %v3408_v18  ;;  %v2719_v18 = vpack.c.bf16 %v2153_v16, %v2152_v11 }
0x15ea   :  { %v1973_v2 = vsel %vm1965_vm3, %v1972_v23, %v3383_v35  ;;  %v1933_v9 = vpop.permute.xlu1 %1932 }
0x15eb   :  { %v1974_v39 = vsel %vm1967_vm4, %v1973_v2, %v3357_v49  ;;  %v1935_v10 = vmul.f32 %v2870_v46, %v1933_v9 }
0x15ec   :  { %1984 = vrot.lane.b32.xlu0 %v1974_v39, %s3011_s19 }
0x15ed   :  { %v1971_v56 = vsel %vm1967_vm4, %v3416_v29, %v1935_v10  ;;  %v2265_v29 = vld [vmem:[%s3514_s11 + $0x10] sm:$0xff] }
0x15ee   :  { %2071 = vrot.lane.b32.xlu1 %v1971_v56, %s3011_s19  ;;  %v1987_v35 = vpop.permute.xlu1 %1986  ;;  %v2727_v31 = vpack.c.bf16 %v2266_v30, %v2265_v29 }
0x15f0   :  { %2069 = vrot.lane.b32.xlu0 %v3334_v6, %s3011_s19  ;;  %v2879_v6 = vld [vmem:[%s3503_s0] sm:$0xff]  ;;  %2728 = vmatpush3.bf16.msra.mxu1 %v2727_v31 }
0x165e   :  { %v1985_v17 = vpop.permute.xlu0 %1984 }
0x165f   :  { %2627 = vmatprep.mubr.msk.f32.mxu0 %vm111_vm0, %v1985_v17 }
0x1660   :  { %2628 = vmatmul.mubr.msk.f32.vlgmr.msra.gmra.mrb[18].mxu0 %vm111_vm0, %v1987_v35  ;;  %v2072_v19 = vpop.permute.xlu1 %2071 }
0x1661   :  { %2718 = vmatpush3.bf16.msra.mxu0 %v2715_v5 }
0x1662   :  { %v2070_v49 = vpop.permute.xlu0 %2069  ;;  %2720 = vmatprep.subr.bf16.mxu0 %v2719_v18 }
0x1663   :  { %2634 = vmatprep.mubr.msk.f32.mxu0 %vm111_vm0, %v2070_v49 }
0x1668   :  { %2635 = vmatmul.mubr.msk.f32.vlgmr.msra.gmra.mrb[18].mxu0 %vm111_vm0, %v2072_v19 }
0x1669   :  { %2722 = vmatpush3.bf16.msra.mxu0 %v2719_v18  ;;  %2641 = vmatprep.mubr.msk.f32.mxu0 %vm111_vm0, %v2879_v6 }
0x1670   :  { %2642 = vmatmul.mubr.msk.f32.vlgmr.msra.gmra.mrb[18].mxu0 %vm111_vm0, %v2880_v21 }
0x1743   :  { %v2643_v51 = vpop.f32.mrb[18].mxu0 }
0x1744   :  { %v2220_v33 = vpop.f32.mrb[19].mxu0  ;;  %v2239_v36 = vadd.f32 %v2643_v51, %v2421_v32 }
0x1745   :  { %v2238_v59 = vadd.f32 %v2421_v32, %v2220_v33 }
0x1746   :  { %v2241_v15 = vmax.f32 %v2239_v36, 0.0 }
0x1747   :  { %v2240_v34 = vmax.f32 %v2238_v59, 0.0 }
0x1748   :  { %v2254_v43 = vrot.slane %v2241_v15, 2  ;;  %v2257_v44 = vrot.slane %v2241_v15, 4  ;;  %v2260_v26 = vrot.slane %v2241_v15, 6 }
0x1749   :  { %v2243_v37 = vrot.slane %v2240_v34, 2  ;;  %v2246_v40 = vrot.slane %v2240_v34, 4  ;;  %v2249_v42 = vrot.slane %v2240_v34, 6 }
0x174b   :  { %v2245_v38 = vmax.f32 %v2240_v34, %v2243_v37 }
0x174d   :  { %v2248_v41 = vmax.f32 %v2245_v38, %v2246_v40 }
0x174f   :  { %v2251_v20 = vmax.f32 %v2248_v41, %v2249_v42 }
0x1751   :  { %v2252_v13 = vmax.f32 %v2251_v20, %v2241_v15 }
0x1753   :  { %v2256_v45 = vmax.f32 %v2252_v13, %v2254_v43 }
0x1755   :  { %v2259_v22 = vmax.f32 %v2256_v45, %v2257_v44 }
0x1757   :  { %v2262_v46 = vmax.f32 %v2259_v22, %v2260_v26 }
0x1759   :  { %2653 = vmatmul.mubr.msk.f32.vlgmr.msra.gmra.mrb[18].mxu1 %vm2274_vm5, %v2262_v46 }
0x182c   :  { %v2344_v47 = vpop.f32.mrb[18].mxu1 }
0x182d   :  { %v2345_v48 = vadd.f32 %v2422_v12, %v2344_v47  ;;  %v2654_v25 = vpop.f32.mrb[19].mxu1 }
0x182f   :  { %v2349_v50 = vsel %vm2348_vm6, %v2345_v48, -inf }
0x1830   :  { %2350 = vmax.xlane.f32.xlu0 %v2349_v50 }
0x18bd   :  { %v2351_v14 = vpop.xlane.xlu0 %2350 }
0x18be   :  { %v2352_v52 = vsub.f32 %v2345_v48, %v2351_v14 }
0x18c0   :  { %v2353_v53 = vmul.f32 1.442695, %v2352_v52 }
0x18c2   :  { %2875 = vpow2.f32 %v2353_v53 }
0x18cc   :  { %v2876_v54 = vpop.eup %2875 }
0x18cd   :  { %v2355_v55 = vsel %vm2348_vm6, %v2876_v54, 0.0 }
0x18ce   :  { %2356 = vadd.xlane.f32.xlu1 %v2355_v55 }
0x195b   :  { %v2357_v57 = vpop.xlane.xlu1 %2356 }
0x195c   :  { %2877 = vlog2.f32 %v2357_v57 }
0x1966   :  { %v2878_v58 = vpop.eup %2877 }
0x1967   :  { %v2359_v60 = vmul.f32 0.6931472, %v2878_v58 }
0x1969   :  { %v2360_v61 = vsub.f32 %v2352_v52, %v2359_v60 }
0x196b   :  { %2361 = vst.msk [vmem:[#allocation10] sm:$0x3] %vm2348_vm6, %v2360_v61 }
0x196c   :  { %2980 = shalt.err (!%p2977_p8)
}
0x196d   :  { %s2981_s26 = scalar_lea.hbm %s3516_s13, 32 }
0x196e   :  { %p2982_p9 = scmp.ne.s32.totalorder %s3516_s13, %s2981_s26  ;;  %p2985_p10 = scmp.lt.u32.totalorder %s2981_s26, %s3516_s13 }
0x1970   :  { %p2987_p11 = pnand %p2985_p10, %p2982_p9 }
0x1972   :  { %2990 = shalt.err (!%p2987_p11)
}
0x1973   :  { %2371 = dma.vmem_to_hbm [thread:$0]  %s2369_s12, 32, %s3516_s13, [#allocation4]  }
0x1974   :  { %2997 = dma.done.wait [#allocation4], 32  }
0x1975   :  { %2998 = vsyncadd [#allocation4], 4294967264 }
0x1976   :  { %2375 = vsyncpa [#allocation3], 1 }
0x1977   :  { %2376 = vsyncpa [#allocation6], 1 }
0x1978   :  { %2377 = vsyncpa [#allocation9], 1 }
0x1979   :  { %2378 = vsyncpa [#allocation4], 1 }

</bundles_post_ra>
